<compile_context>
chip_gen: v6e
topology: v6e:2x2x1
jax: 0.10.0
libtpu: 0.0.40
codegen_flags: <defaults>
</compile_context>

<pallas_src>
import numpy as np
import jax
import jax.numpy as jnp
from jax.experimental import pallas as pl
from jax.experimental.pallas import tpu as pltpu

HIDDEN = 10
NCLASS = 3
KSIZE = 3
STRIDE = 3

# Static layout of the packed (16, 128) weight slab.
ROW_WHH = 0            # rows 0..H-1, cols 0..4H-1 : W_hh.T (gate-scaled)
ROW_WIH = HIDDEN       # row 10,      cols 0..4H-1 : W_ih.T (gate-scaled)
ROW_BG = HIDDEN + 1    # row 11,      cols 0..4H-1 : b_ih + b_hh (gate-scaled)
ROW_BM = HIDDEN + 2    # row 12,      cols 64..66  : mlp bias
COL_MLP = 64           # rows 0..H-1, cols 64..66  : W_mlp.T


def _tree_sum(terms):
    """Balanced-tree sum: keeps the VPU add-chain depth ~log2(n)."""
    while len(terms) > 1:
        nxt = [terms[i] + terms[i + 1] for i in range(0, len(terms) - 1, 2)]
        if len(terms) % 2:
            nxt.append(terms[-1])
        terms = nxt
    return terms[0]


def net_kernel(conv_ref, x_ref, w_ref, out_ref):
    B = x_ref.shape[0]
    T = x_ref.shape[1] // KSIZE
    H = HIDDEN
    G = 4 * H

    # ---- Single slab load + static-offset slices (one DMA for all weights) --
    slab = w_ref[...]                                        # (16, 128)
    whh = slab[ROW_WHH:ROW_WHH + H, 0:G]                     # (H, 4H)
    wih_b = jnp.broadcast_to(slab[ROW_WIH:ROW_WIH + 1, 0:G], (B, G))
    bg_b = jnp.broadcast_to(slab[ROW_BG:ROW_BG + 1, 0:G], (B, G))
    wmlp = slab[0:H, COL_MLP:COL_MLP + NCLASS]               # (H, 3)
    bm_b = jnp.broadcast_to(
        slab[ROW_BM:ROW_BM + 1, COL_MLP:COL_MLP + NCLASS], (B, NCLASS))

    # Loop-invariant sublane broadcasts hoisted out of the recurrence
    # (JAX does not CSE broadcast_in_dim; without this the 8-way unroll would
    # re-emit 10 whh-row broadcasts every step).
    whh_rows = [jnp.broadcast_to(whh[k:k + 1, :], (B, G)) for k in range(H)]
    wmlp_rows = [jnp.broadcast_to(wmlp[k:k + 1, :], (B, NCLASS))
                 for k in range(H)]

    # ---- Conv1d(1,1,k=3,s=3) + ReLU + hoisted input projection --------------
    # stride == kernel -> non-overlapping windows; taps are static lane slices.
    cw0 = conv_ref[0]
    cw1 = conv_ref[1]
    cw2 = conv_ref[2]
    cb = conv_ref[3]
    x = x_ref[...]                                           # (B, 3T)
    gates_in = []
    for t in range(T):                                       # static unroll
        w = x[:, KSIZE * t:KSIZE * t + KSIZE]                # (B, 3)
        conv_t = jnp.maximum(
            w[:, 0:1] * cw0 + w[:, 1:2] * cw1 + w[:, 2:3] * cw2 + cb, 0.0)
        # gates_in[t] = x_t * W_ih.T + (b_ih + b_hh)  (gate columns pre-scaled)
        gates_in.append(conv_t * wih_b + bg_b)               # (B, 4H)

    # ---- LSTM(1, 10): fully unrolled over the static T timesteps ------------
    h = jnp.zeros((B, H), jnp.float32)
    c = jnp.zeros((B, H), jnp.float32)
    for t in range(T):                                       # static unroll
        # recurrent contraction on the VPU; only the data-dependent h[:,k]
        # lane broadcasts remain on the serial chain (whh rows are hoisted).
        terms = [gates_in[t]] + [h[:, k:k + 1] * whh_rows[k] for k in range(H)]
        gates = _tree_sum(terms)                             # (B, 4H)
        # Single EUP push for all four gates: i/f/o columns were pre-scaled by
        # 0.5 in prepare_params, so sigmoid(raw) == 0.5*tanh(0.5*raw) + 0.5.
        tt = jnp.tanh(gates)
        i_g = 0.5 * tt[:, 0:H] + 0.5
        f_g = 0.5 * tt[:, H:2 * H] + 0.5
        g_g = tt[:, 2 * H:3 * H]
        o_g = 0.5 * tt[:, 3 * H:4 * H] + 0.5
        c = f_g * c + i_g * g_g
        h = o_g * jnp.tanh(c)

    # ---- Linear(10, 3) on the final hidden state (VPU MAC as well) ----------
    terms = [bm_b] + [h[:, k:k + 1] * wmlp_rows[k] for k in range(H)]
    out_ref[...] = _tree_sum(terms)


def prepare_params(params):
    """One-time host-side packing (hoisted out of the per-call wrapper).

    Returns:
      conv_sc: (4,) f32  = [cw0, cw1, cw2, cb]              -> SMEM
      slab:    (16,128) f32 lane-dense packed weight slab   -> VMEM
    i/f/o gate columns are pre-scaled by 0.5 so the kernel can use a single
    tanh for all four gate activations.
    """
    cw, cb, w_ih, w_hh, b_ih, b_hh, w_mlp, b_mlp = params
    H = HIDDEN
    colscale = np.concatenate([
        0.5 * np.ones(2 * H, np.float32),     # i, f
        np.ones(H, np.float32),               # g (plain tanh)
        0.5 * np.ones(H, np.float32),         # o
    ])
    slab = np.zeros((16, 128), np.float32)
    slab[ROW_WHH:ROW_WHH + H, 0:4 * H] = (
        np.asarray(w_hh, np.float32).T * colscale[None, :])
    slab[ROW_WIH, 0:4 * H] = np.asarray(w_ih, np.float32)[:, 0] * colscale
    slab[ROW_BG, 0:4 * H] = (
        (np.asarray(b_ih, np.float32) + np.asarray(b_hh, np.float32)) * colscale)
    slab[0:H, COL_MLP:COL_MLP + NCLASS] = np.asarray(w_mlp, np.float32).T
    slab[ROW_BM, COL_MLP:COL_MLP + NCLASS] = np.asarray(b_mlp, np.float32)
    conv_sc = np.concatenate(
        [np.asarray(cw, np.float32).reshape(-1),
         np.asarray(cb, np.float32).reshape(-1)])
    return jnp.asarray(conv_sc), jnp.asarray(slab)


def net_forward(x, prepared):
    """x: (B, L, 1) float32, prepared = prepare_params(params) -> (B, 3)."""
    conv_sc, slab = prepared
    B, L, _ = x.shape
    T = (L - KSIZE) // STRIDE + 1
    # Only per-call wrapper op: lane-dense (B, 3T) slice of the input.
    xs = x[:, :KSIZE * T, 0].astype(jnp.float32)             # (B, 3T)

    smem = pl.BlockSpec(memory_space=pltpu.MemorySpace.SMEM)
    vmem = pl.BlockSpec(memory_space=pltpu.MemorySpace.VMEM)

    # TODO(synk): for large B, first fill the sublane dim (B tile of 8), then
    # on v7x add a batch grid axis with dimension_semantics=("parallel",).
    return pl.pallas_call(
        net_kernel,
        out_shape=jax.ShapeDtypeStruct((B, NCLASS), jnp.float32),
        in_specs=[smem, vmem, vmem],
        out_specs=vmem,
    )(conv_sc, xs, slab)


def init_params(key):
    """Deterministic param init mirroring the PyTorch module's shapes."""
    ks = jax.random.split(key, 8)
    b_conv = 1.0 / np.sqrt(3.0)        # fan_in = in_channels * k = 3
    b_lstm = 1.0 / np.sqrt(HIDDEN)
    b_lin = 1.0 / np.sqrt(HIDDEN)
    u = lambda k, s, b: jax.random.uniform(k, s, jnp.float32, -b, b)
    cw = u(ks[0], (KSIZE,), b_conv)                  # conv1.weight (1,1,3) squeezed
    cb = u(ks[1], (1,), b_conv)                      # conv1.bias
    w_ih = u(ks[2], (4 * HIDDEN, 1), b_lstm)         # rnn.weight_ih_l0
    w_hh = u(ks[3], (4 * HIDDEN, HIDDEN), b_lstm)    # rnn.weight_hh_l0
    b_ih = u(ks[4], (4 * HIDDEN,), b_lstm)           # rnn.bias_ih_l0
    b_hh = u(ks[5], (4 * HIDDEN,), b_lstm)           # rnn.bias_hh_l0
    w_mlp = u(ks[6], (NCLASS, HIDDEN), b_lin)        # mlp.weight
    b_mlp = u(ks[7], (NCLASS,), b_lin)               # mlp.bias
    return (cw, cb, w_ih, w_hh, b_ih, b_hh, w_mlp, b_mlp)


def net_reference(x, params):
    """Pure-JAX reference matching the PyTorch forward exactly."""
    cw, cb, w_ih, w_hh, b_ih, b_hh, w_mlp, b_mlp = params
    B, L, _ = x.shape
    T = (L - KSIZE) // STRIDE + 1
    xc = x[:, :, 0]
    conv = jnp.stack(
        [xc[:, STRIDE * t:STRIDE * t + KSIZE] @ cw for t in range(T)], axis=1
    ) + cb[0]
    conv = jnp.maximum(conv, 0.0)                            # (B, T)
    h = jnp.zeros((B, HIDDEN), jnp.float32)
    c = jnp.zeros((B, HIDDEN), jnp.float32)
    for t in range(T):
        x_t = conv[:, t:t + 1]
        gates = x_t @ w_ih.T + h @ w_hh.T + b_ih + b_hh
        i_g = jax.nn.sigmoid(gates[:, 0:HIDDEN])
        f_g = jax.nn.sigmoid(gates[:, HIDDEN:2 * HIDDEN])
        g_g = jnp.tanh(gates[:, 2 * HIDDEN:3 * HIDDEN])
        o_g = jax.nn.sigmoid(gates[:, 3 * HIDDEN:4 * HIDDEN])
        c = f_g * c + i_g * g_g
        h = o_g * jnp.tanh(c)
    return h @ w_mlp.T + b_mlp


if __name__ == "__main__":
    key = jax.random.PRNGKey(0)
    k_x, k_p = jax.random.split(key)

    B, L = 2, 24                      # -> conv output length T = 8
    x = jax.random.normal(k_x, (B, L, 1), dtype=jnp.float32)
    params = init_params(k_p)
    prepared = prepare_params(params)   # one-time weight packing (not per call)

    out = net_forward(x, prepared)
    out = jax.block_until_ready(out)

    ref = net_reference(x, params)
    assert out.shape == (B, NCLASS)
    np.testing.assert_allclose(np.asarray(out), np.asarray(ref),
                               rtol=2e-3, atol=2e-3)
    print("KERNEL_OK")
</pallas_src>

<mosaic_0001>
module attributes {stable_mosaic.version = 11 : i64} {
  func.func @net_kernel(%arg0: memref<4xf32, #tpu.memory_space<smem>>, %arg1: memref<2x24xf32, #tpu.memory_space<vmem>>, %arg2: memref<16x128xf32, #tpu.memory_space<vmem>>, %arg3: memref<2x3xf32, #tpu.memory_space<vmem>>) attributes {dimension_semantics = [], scalar_prefetch = 0 : i64, scratch_operands = 0 : i64, tpu.core_type = #tpu.core_type<tc>} {
    %c0 = arith.constant 0 : index
    %c0_0 = arith.constant 0 : index
    %0 = vector.load %arg2[%c0, %c0_0] : memref<16x128xf32, #tpu.memory_space<vmem>>, vector<16x128xf32>
    %1 = vector.extract_strided_slice %0 {offsets = [0, 0], sizes = [10, 40], strides = [1, 1]} : vector<16x128xf32> to vector<10x40xf32>
    %2 = vector.extract_strided_slice %0 {offsets = [10, 0], sizes = [1, 40], strides = [1, 1]} : vector<16x128xf32> to vector<1x40xf32>
    %3 = vector.shape_cast %2 : vector<1x40xf32> to vector<1x40xf32>
    %4 = vector.broadcast %3 : vector<1x40xf32> to vector<2x40xf32>
    %5 = vector.extract_strided_slice %0 {offsets = [11, 0], sizes = [1, 40], strides = [1, 1]} : vector<16x128xf32> to vector<1x40xf32>
    %6 = vector.shape_cast %5 : vector<1x40xf32> to vector<1x40xf32>
    %7 = vector.broadcast %6 : vector<1x40xf32> to vector<2x40xf32>
    %8 = vector.extract_strided_slice %0 {offsets = [0, 64], sizes = [10, 3], strides = [1, 1]} : vector<16x128xf32> to vector<10x3xf32>
    %9 = vector.extract_strided_slice %0 {offsets = [12, 64], sizes = [1, 3], strides = [1, 1]} : vector<16x128xf32> to vector<1x3xf32>
    %10 = vector.shape_cast %9 : vector<1x3xf32> to vector<1x3xf32>
    %11 = vector.broadcast %10 : vector<1x3xf32> to vector<2x3xf32>
    %12 = vector.extract_strided_slice %1 {offsets = [0, 0], sizes = [1, 40], strides = [1, 1]} : vector<10x40xf32> to vector<1x40xf32>
    %13 = vector.shape_cast %12 : vector<1x40xf32> to vector<1x40xf32>
    %14 = vector.broadcast %13 : vector<1x40xf32> to vector<2x40xf32>
    %15 = vector.extract_strided_slice %1 {offsets = [1, 0], sizes = [1, 40], strides = [1, 1]} : vector<10x40xf32> to vector<1x40xf32>
    %16 = vector.shape_cast %15 : vector<1x40xf32> to vector<1x40xf32>
    %17 = vector.broadcast %16 : vector<1x40xf32> to vector<2x40xf32>
    %18 = vector.extract_strided_slice %1 {offsets = [2, 0], sizes = [1, 40], strides = [1, 1]} : vector<10x40xf32> to vector<1x40xf32>
    %19 = vector.shape_cast %18 : vector<1x40xf32> to vector<1x40xf32>
    %20 = vector.broadcast %19 : vector<1x40xf32> to vector<2x40xf32>
    %21 = vector.extract_strided_slice %1 {offsets = [3, 0], sizes = [1, 40], strides = [1, 1]} : vector<10x40xf32> to vector<1x40xf32>
    %22 = vector.shape_cast %21 : vector<1x40xf32> to vector<1x40xf32>
    %23 = vector.broadcast %22 : vector<1x40xf32> to vector<2x40xf32>
    %24 = vector.extract_strided_slice %1 {offsets = [4, 0], sizes = [1, 40], strides = [1, 1]} : vector<10x40xf32> to vector<1x40xf32>
    %25 = vector.shape_cast %24 : vector<1x40xf32> to vector<1x40xf32>
    %26 = vector.broadcast %25 : vector<1x40xf32> to vector<2x40xf32>
    %27 = vector.extract_strided_slice %1 {offsets = [5, 0], sizes = [1, 40], strides = [1, 1]} : vector<10x40xf32> to vector<1x40xf32>
    %28 = vector.shape_cast %27 : vector<1x40xf32> to vector<1x40xf32>
    %29 = vector.broadcast %28 : vector<1x40xf32> to vector<2x40xf32>
    %30 = vector.extract_strided_slice %1 {offsets = [6, 0], sizes = [1, 40], strides = [1, 1]} : vector<10x40xf32> to vector<1x40xf32>
    %31 = vector.shape_cast %30 : vector<1x40xf32> to vector<1x40xf32>
    %32 = vector.broadcast %31 : vector<1x40xf32> to vector<2x40xf32>
    %33 = vector.extract_strided_slice %1 {offsets = [7, 0], sizes = [1, 40], strides = [1, 1]} : vector<10x40xf32> to vector<1x40xf32>
    %34 = vector.shape_cast %33 : vector<1x40xf32> to vector<1x40xf32>
    %35 = vector.broadcast %34 : vector<1x40xf32> to vector<2x40xf32>
    %36 = vector.extract_strided_slice %1 {offsets = [8, 0], sizes = [1, 40], strides = [1, 1]} : vector<10x40xf32> to vector<1x40xf32>
    %37 = vector.shape_cast %36 : vector<1x40xf32> to vector<1x40xf32>
    %38 = vector.broadcast %37 : vector<1x40xf32> to vector<2x40xf32>
    %39 = vector.extract_strided_slice %1 {offsets = [9, 0], sizes = [1, 40], strides = [1, 1]} : vector<10x40xf32> to vector<1x40xf32>
    %40 = vector.shape_cast %39 : vector<1x40xf32> to vector<1x40xf32>
    %41 = vector.broadcast %40 : vector<1x40xf32> to vector<2x40xf32>
    %42 = vector.extract_strided_slice %8 {offsets = [0, 0], sizes = [1, 3], strides = [1, 1]} : vector<10x3xf32> to vector<1x3xf32>
    %43 = vector.shape_cast %42 : vector<1x3xf32> to vector<1x3xf32>
    %44 = vector.broadcast %43 : vector<1x3xf32> to vector<2x3xf32>
    %45 = vector.extract_strided_slice %8 {offsets = [1, 0], sizes = [1, 3], strides = [1, 1]} : vector<10x3xf32> to vector<1x3xf32>
    %46 = vector.shape_cast %45 : vector<1x3xf32> to vector<1x3xf32>
    %47 = vector.broadcast %46 : vector<1x3xf32> to vector<2x3xf32>
    %48 = vector.extract_strided_slice %8 {offsets = [2, 0], sizes = [1, 3], strides = [1, 1]} : vector<10x3xf32> to vector<1x3xf32>
    %49 = vector.shape_cast %48 : vector<1x3xf32> to vector<1x3xf32>
    %50 = vector.broadcast %49 : vector<1x3xf32> to vector<2x3xf32>
    %51 = vector.extract_strided_slice %8 {offsets = [3, 0], sizes = [1, 3], strides = [1, 1]} : vector<10x3xf32> to vector<1x3xf32>
    %52 = vector.shape_cast %51 : vector<1x3xf32> to vector<1x3xf32>
    %53 = vector.broadcast %52 : vector<1x3xf32> to vector<2x3xf32>
    %54 = vector.extract_strided_slice %8 {offsets = [4, 0], sizes = [1, 3], strides = [1, 1]} : vector<10x3xf32> to vector<1x3xf32>
    %55 = vector.shape_cast %54 : vector<1x3xf32> to vector<1x3xf32>
    %56 = vector.broadcast %55 : vector<1x3xf32> to vector<2x3xf32>
    %57 = vector.extract_strided_slice %8 {offsets = [5, 0], sizes = [1, 3], strides = [1, 1]} : vector<10x3xf32> to vector<1x3xf32>
    %58 = vector.shape_cast %57 : vector<1x3xf32> to vector<1x3xf32>
    %59 = vector.broadcast %58 : vector<1x3xf32> to vector<2x3xf32>
    %60 = vector.extract_strided_slice %8 {offsets = [6, 0], sizes = [1, 3], strides = [1, 1]} : vector<10x3xf32> to vector<1x3xf32>
    %61 = vector.shape_cast %60 : vector<1x3xf32> to vector<1x3xf32>
    %62 = vector.broadcast %61 : vector<1x3xf32> to vector<2x3xf32>
    %63 = vector.extract_strided_slice %8 {offsets = [7, 0], sizes = [1, 3], strides = [1, 1]} : vector<10x3xf32> to vector<1x3xf32>
    %64 = vector.shape_cast %63 : vector<1x3xf32> to vector<1x3xf32>
    %65 = vector.broadcast %64 : vector<1x3xf32> to vector<2x3xf32>
    %66 = vector.extract_strided_slice %8 {offsets = [8, 0], sizes = [1, 3], strides = [1, 1]} : vector<10x3xf32> to vector<1x3xf32>
    %67 = vector.shape_cast %66 : vector<1x3xf32> to vector<1x3xf32>
    %68 = vector.broadcast %67 : vector<1x3xf32> to vector<2x3xf32>
    %69 = vector.extract_strided_slice %8 {offsets = [9, 0], sizes = [1, 3], strides = [1, 1]} : vector<10x3xf32> to vector<1x3xf32>
    %70 = vector.shape_cast %69 : vector<1x3xf32> to vector<1x3xf32>
    %71 = vector.broadcast %70 : vector<1x3xf32> to vector<2x3xf32>
    %c0_1 = arith.constant 0 : index
    %72 = memref.load %arg0[%c0_1] : memref<4xf32, #tpu.memory_space<smem>>
    %c1 = arith.constant 1 : index
    %73 = memref.load %arg0[%c1] : memref<4xf32, #tpu.memory_space<smem>>
    %c2 = arith.constant 2 : index
    %74 = memref.load %arg0[%c2] : memref<4xf32, #tpu.memory_space<smem>>
    %c3 = arith.constant 3 : index
    %75 = memref.load %arg0[%c3] : memref<4xf32, #tpu.memory_space<smem>>
    %c0_2 = arith.constant 0 : index
    %c0_3 = arith.constant 0 : index
    %76 = vector.load %arg1[%c0_2, %c0_3] : memref<2x24xf32, #tpu.memory_space<vmem>>, vector<2x24xf32>
    %77 = vector.extract_strided_slice %76 {offsets = [0, 0], sizes = [2, 3], strides = [1, 1]} : vector<2x24xf32> to vector<2x3xf32>
    %78 = vector.extract_strided_slice %77 {offsets = [0, 0], sizes = [2, 1], strides = [1, 1]} : vector<2x3xf32> to vector<2x1xf32>
    %79 = vector.broadcast %72 : f32 to vector<2x1xf32>
    %80 = arith.mulf %78, %79 : vector<2x1xf32>
    %81 = vector.extract_strided_slice %77 {offsets = [0, 1], sizes = [2, 1], strides = [1, 1]} : vector<2x3xf32> to vector<2x1xf32>
    %82 = vector.broadcast %73 : f32 to vector<2x1xf32>
    %83 = arith.mulf %81, %82 : vector<2x1xf32>
    %84 = arith.addf %80, %83 : vector<2x1xf32>
    %85 = vector.extract_strided_slice %77 {offsets = [0, 2], sizes = [2, 1], strides = [1, 1]} : vector<2x3xf32> to vector<2x1xf32>
    %86 = vector.broadcast %74 : f32 to vector<2x1xf32>
    %87 = arith.mulf %85, %86 : vector<2x1xf32>
    %88 = arith.addf %84, %87 : vector<2x1xf32>
    %89 = vector.broadcast %75 : f32 to vector<2x1xf32>
    %90 = arith.addf %88, %89 : vector<2x1xf32>
    %cst = arith.constant 0.000000e+00 : f32
    %91 = vector.broadcast %cst : f32 to vector<2x1xf32>
    %92 = arith.maximumf %90, %91 : vector<2x1xf32>
    %93 = vector.broadcast %92 : vector<2x1xf32> to vector<2x40xf32>
    %94 = arith.mulf %93, %4 : vector<2x40xf32>
    %95 = arith.addf %94, %7 : vector<2x40xf32>
    %96 = vector.extract_strided_slice %76 {offsets = [0, 3], sizes = [2, 3], strides = [1, 1]} : vector<2x24xf32> to vector<2x3xf32>
    %97 = vector.extract_strided_slice %96 {offsets = [0, 0], sizes = [2, 1], strides = [1, 1]} : vector<2x3xf32> to vector<2x1xf32>
    %98 = vector.broadcast %72 : f32 to vector<2x1xf32>
    %99 = arith.mulf %97, %98 : vector<2x1xf32>
    %100 = vector.extract_strided_slice %96 {offsets = [0, 1], sizes = [2, 1], strides = [1, 1]} : vector<2x3xf32> to vector<2x1xf32>
    %101 = vector.broadcast %73 : f32 to vector<2x1xf32>
    %102 = arith.mulf %100, %101 : vector<2x1xf32>
    %103 = arith.addf %99, %102 : vector<2x1xf32>
    %104 = vector.extract_strided_slice %96 {offsets = [0, 2], sizes = [2, 1], strides = [1, 1]} : vector<2x3xf32> to vector<2x1xf32>
    %105 = vector.broadcast %74 : f32 to vector<2x1xf32>
    %106 = arith.mulf %104, %105 : vector<2x1xf32>
    %107 = arith.addf %103, %106 : vector<2x1xf32>
    %108 = vector.broadcast %75 : f32 to vector<2x1xf32>
    %109 = arith.addf %107, %108 : vector<2x1xf32>
    %cst_4 = arith.constant 0.000000e+00 : f32
    %110 = vector.broadcast %cst_4 : f32 to vector<2x1xf32>
    %111 = arith.maximumf %109, %110 : vector<2x1xf32>
    %112 = vector.broadcast %111 : vector<2x1xf32> to vector<2x40xf32>
    %113 = arith.mulf %112, %4 : vector<2x40xf32>
    %114 = arith.addf %113, %7 : vector<2x40xf32>
    %115 = vector.extract_strided_slice %76 {offsets = [0, 6], sizes = [2, 3], strides = [1, 1]} : vector<2x24xf32> to vector<2x3xf32>
    %116 = vector.extract_strided_slice %115 {offsets = [0, 0], sizes = [2, 1], strides = [1, 1]} : vector<2x3xf32> to vector<2x1xf32>
    %117 = vector.broadcast %72 : f32 to vector<2x1xf32>
    %118 = arith.mulf %116, %117 : vector<2x1xf32>
    %119 = vector.extract_strided_slice %115 {offsets = [0, 1], sizes = [2, 1], strides = [1, 1]} : vector<2x3xf32> to vector<2x1xf32>
    %120 = vector.broadcast %73 : f32 to vector<2x1xf32>
    %121 = arith.mulf %119, %120 : vector<2x1xf32>
    %122 = arith.addf %118, %121 : vector<2x1xf32>
    %123 = vector.extract_strided_slice %115 {offsets = [0, 2], sizes = [2, 1], strides = [1, 1]} : vector<2x3xf32> to vector<2x1xf32>
    %124 = vector.broadcast %74 : f32 to vector<2x1xf32>
    %125 = arith.mulf %123, %124 : vector<2x1xf32>
    %126 = arith.addf %122, %125 : vector<2x1xf32>
    %127 = vector.broadcast %75 : f32 to vector<2x1xf32>
    %128 = arith.addf %126, %127 : vector<2x1xf32>
    %cst_5 = arith.constant 0.000000e+00 : f32
    %129 = vector.broadcast %cst_5 : f32 to vector<2x1xf32>
    %130 = arith.maximumf %128, %129 : vector<2x1xf32>
    %131 = vector.broadcast %130 : vector<2x1xf32> to vector<2x40xf32>
    %132 = arith.mulf %131, %4 : vector<2x40xf32>
    %133 = arith.addf %132, %7 : vector<2x40xf32>
    %134 = vector.extract_strided_slice %76 {offsets = [0, 9], sizes = [2, 3], strides = [1, 1]} : vector<2x24xf32> to vector<2x3xf32>
    %135 = vector.extract_strided_slice %134 {offsets = [0, 0], sizes = [2, 1], strides = [1, 1]} : vector<2x3xf32> to vector<2x1xf32>
    %136 = vector.broadcast %72 : f32 to vector<2x1xf32>
    %137 = arith.mulf %135, %136 : vector<2x1xf32>
    %138 = vector.extract_strided_slice %134 {offsets = [0, 1], sizes = [2, 1], strides = [1, 1]} : vector<2x3xf32> to vector<2x1xf32>
    %139 = vector.broadcast %73 : f32 to vector<2x1xf32>
    %140 = arith.mulf %138, %139 : vector<2x1xf32>
    %141 = arith.addf %137, %140 : vector<2x1xf32>
    %142 = vector.extract_strided_slice %134 {offsets = [0, 2], sizes = [2, 1], strides = [1, 1]} : vector<2x3xf32> to vector<2x1xf32>
    %143 = vector.broadcast %74 : f32 to vector<2x1xf32>
    %144 = arith.mulf %142, %143 : vector<2x1xf32>
    %145 = arith.addf %141, %144 : vector<2x1xf32>
    %146 = vector.broadcast %75 : f32 to vector<2x1xf32>
    %147 = arith.addf %145, %146 : vector<2x1xf32>
    %cst_6 = arith.constant 0.000000e+00 : f32
    %148 = vector.broadcast %cst_6 : f32 to vector<2x1xf32>
    %149 = arith.maximumf %147, %148 : vector<2x1xf32>
    %150 = vector.broadcast %149 : vector<2x1xf32> to vector<2x40xf32>
    %151 = arith.mulf %150, %4 : vector<2x40xf32>
    %152 = arith.addf %151, %7 : vector<2x40xf32>
    %153 = vector.extract_strided_slice %76 {offsets = [0, 12], sizes = [2, 3], strides = [1, 1]} : vector<2x24xf32> to vector<2x3xf32>
    %154 = vector.extract_strided_slice %153 {offsets = [0, 0], sizes = [2, 1], strides = [1, 1]} : vector<2x3xf32> to vector<2x1xf32>
    %155 = vector.broadcast %72 : f32 to vector<2x1xf32>
    %156 = arith.mulf %154, %155 : vector<2x1xf32>
    %157 = vector.extract_strided_slice %153 {offsets = [0, 1], sizes = [2, 1], strides = [1, 1]} : vector<2x3xf32> to vector<2x1xf32>
    %158 = vector.broadcast %73 : f32 to vector<2x1xf32>
    %159 = arith.mulf %157, %158 : vector<2x1xf32>
    %160 = arith.addf %156, %159 : vector<2x1xf32>
    %161 = vector.extract_strided_slice %153 {offsets = [0, 2], sizes = [2, 1], strides = [1, 1]} : vector<2x3xf32> to vector<2x1xf32>
    %162 = vector.broadcast %74 : f32 to vector<2x1xf32>
    %163 = arith.mulf %161, %162 : vector<2x1xf32>
    %164 = arith.addf %160, %163 : vector<2x1xf32>
    %165 = vector.broadcast %75 : f32 to vector<2x1xf32>
    %166 = arith.addf %164, %165 : vector<2x1xf32>
    %cst_7 = arith.constant 0.000000e+00 : f32
    %167 = vector.broadcast %cst_7 : f32 to vector<2x1xf32>
    %168 = arith.maximumf %166, %167 : vector<2x1xf32>
    %169 = vector.broadcast %168 : vector<2x1xf32> to vector<2x40xf32>
    %170 = arith.mulf %169, %4 : vector<2x40xf32>
    %171 = arith.addf %170, %7 : vector<2x40xf32>
    %172 = vector.extract_strided_slice %76 {offsets = [0, 15], sizes = [2, 3], strides = [1, 1]} : vector<2x24xf32> to vector<2x3xf32>
    %173 = vector.extract_strided_slice %172 {offsets = [0, 0], sizes = [2, 1], strides = [1, 1]} : vector<2x3xf32> to vector<2x1xf32>
    %174 = vector.broadcast %72 : f32 to vector<2x1xf32>
    %175 = arith.mulf %173, %174 : vector<2x1xf32>
    %176 = vector.extract_strided_slice %172 {offsets = [0, 1], sizes = [2, 1], strides = [1, 1]} : vector<2x3xf32> to vector<2x1xf32>
    %177 = vector.broadcast %73 : f32 to vector<2x1xf32>
    %178 = arith.mulf %176, %177 : vector<2x1xf32>
    %179 = arith.addf %175, %178 : vector<2x1xf32>
    %180 = vector.extract_strided_slice %172 {offsets = [0, 2], sizes = [2, 1], strides = [1, 1]} : vector<2x3xf32> to vector<2x1xf32>
    %181 = vector.broadcast %74 : f32 to vector<2x1xf32>
    %182 = arith.mulf %180, %181 : vector<2x1xf32>
    %183 = arith.addf %179, %182 : vector<2x1xf32>
    %184 = vector.broadcast %75 : f32 to vector<2x1xf32>
    %185 = arith.addf %183, %184 : vector<2x1xf32>
    %cst_8 = arith.constant 0.000000e+00 : f32
    %186 = vector.broadcast %cst_8 : f32 to vector<2x1xf32>
    %187 = arith.maximumf %185, %186 : vector<2x1xf32>
    %188 = vector.broadcast %187 : vector<2x1xf32> to vector<2x40xf32>
    %189 = arith.mulf %188, %4 : vector<2x40xf32>
    %190 = arith.addf %189, %7 : vector<2x40xf32>
    %191 = vector.extract_strided_slice %76 {offsets = [0, 18], sizes = [2, 3], strides = [1, 1]} : vector<2x24xf32> to vector<2x3xf32>
    %192 = vector.extract_strided_slice %191 {offsets = [0, 0], sizes = [2, 1], strides = [1, 1]} : vector<2x3xf32> to vector<2x1xf32>
    %193 = vector.broadcast %72 : f32 to vector<2x1xf32>
    %194 = arith.mulf %192, %193 : vector<2x1xf32>
    %195 = vector.extract_strided_slice %191 {offsets = [0, 1], sizes = [2, 1], strides = [1, 1]} : vector<2x3xf32> to vector<2x1xf32>
    %196 = vector.broadcast %73 : f32 to vector<2x1xf32>
    %197 = arith.mulf %195, %196 : vector<2x1xf32>
    %198 = arith.addf %194, %197 : vector<2x1xf32>
    %199 = vector.extract_strided_slice %191 {offsets = [0, 2], sizes = [2, 1], strides = [1, 1]} : vector<2x3xf32> to vector<2x1xf32>
    %200 = vector.broadcast %74 : f32 to vector<2x1xf32>
    %201 = arith.mulf %199, %200 : vector<2x1xf32>
    %202 = arith.addf %198, %201 : vector<2x1xf32>
    %203 = vector.broadcast %75 : f32 to vector<2x1xf32>
    %204 = arith.addf %202, %203 : vector<2x1xf32>
    %cst_9 = arith.constant 0.000000e+00 : f32
    %205 = vector.broadcast %cst_9 : f32 to vector<2x1xf32>
    %206 = arith.maximumf %204, %205 : vector<2x1xf32>
    %207 = vector.broadcast %206 : vector<2x1xf32> to vector<2x40xf32>
    %208 = arith.mulf %207, %4 : vector<2x40xf32>
    %209 = arith.addf %208, %7 : vector<2x40xf32>
    %210 = vector.extract_strided_slice %76 {offsets = [0, 21], sizes = [2, 3], strides = [1, 1]} : vector<2x24xf32> to vector<2x3xf32>
    %211 = vector.extract_strided_slice %210 {offsets = [0, 0], sizes = [2, 1], strides = [1, 1]} : vector<2x3xf32> to vector<2x1xf32>
    %212 = vector.broadcast %72 : f32 to vector<2x1xf32>
    %213 = arith.mulf %211, %212 : vector<2x1xf32>
    %214 = vector.extract_strided_slice %210 {offsets = [0, 1], sizes = [2, 1], strides = [1, 1]} : vector<2x3xf32> to vector<2x1xf32>
    %215 = vector.broadcast %73 : f32 to vector<2x1xf32>
    %216 = arith.mulf %214, %215 : vector<2x1xf32>
    %217 = arith.addf %213, %216 : vector<2x1xf32>
    %218 = vector.extract_strided_slice %210 {offsets = [0, 2], sizes = [2, 1], strides = [1, 1]} : vector<2x3xf32> to vector<2x1xf32>
    %219 = vector.broadcast %74 : f32 to vector<2x1xf32>
    %220 = arith.mulf %218, %219 : vector<2x1xf32>
    %221 = arith.addf %217, %220 : vector<2x1xf32>
    %222 = vector.broadcast %75 : f32 to vector<2x1xf32>
    %223 = arith.addf %221, %222 : vector<2x1xf32>
    %cst_10 = arith.constant 0.000000e+00 : f32
    %224 = vector.broadcast %cst_10 : f32 to vector<2x1xf32>
    %225 = arith.maximumf %223, %224 : vector<2x1xf32>
    %226 = vector.broadcast %225 : vector<2x1xf32> to vector<2x40xf32>
    %227 = arith.mulf %226, %4 : vector<2x40xf32>
    %228 = arith.addf %227, %7 : vector<2x40xf32>
    %cst_11 = arith.constant 0.000000e+00 : f32
    %229 = vector.broadcast %cst_11 : f32 to vector<2x10xf32>
    %cst_12 = arith.constant 0.000000e+00 : f32
    %230 = vector.broadcast %cst_12 : f32 to vector<2x10xf32>
    %231 = vector.extract_strided_slice %229 {offsets = [0, 0], sizes = [2, 1], strides = [1, 1]} : vector<2x10xf32> to vector<2x1xf32>
    %232 = vector.broadcast %231 : vector<2x1xf32> to vector<2x40xf32>
    %233 = arith.mulf %232, %14 : vector<2x40xf32>
    %234 = vector.extract_strided_slice %229 {offsets = [0, 1], sizes = [2, 1], strides = [1, 1]} : vector<2x10xf32> to vector<2x1xf32>
    %235 = vector.broadcast %234 : vector<2x1xf32> to vector<2x40xf32>
    %236 = arith.mulf %235, %17 : vector<2x40xf32>
    %237 = vector.extract_strided_slice %229 {offsets = [0, 2], sizes = [2, 1], strides = [1, 1]} : vector<2x10xf32> to vector<2x1xf32>
    %238 = vector.broadcast %237 : vector<2x1xf32> to vector<2x40xf32>
    %239 = arith.mulf %238, %20 : vector<2x40xf32>
    %240 = vector.extract_strided_slice %229 {offsets = [0, 3], sizes = [2, 1], strides = [1, 1]} : vector<2x10xf32> to vector<2x1xf32>
    %241 = vector.broadcast %240 : vector<2x1xf32> to vector<2x40xf32>
    %242 = arith.mulf %241, %23 : vector<2x40xf32>
    %243 = vector.extract_strided_slice %229 {offsets = [0, 4], sizes = [2, 1], strides = [1, 1]} : vector<2x10xf32> to vector<2x1xf32>
    %244 = vector.broadcast %243 : vector<2x1xf32> to vector<2x40xf32>
    %245 = arith.mulf %244, %26 : vector<2x40xf32>
    %246 = vector.extract_strided_slice %229 {offsets = [0, 5], sizes = [2, 1], strides = [1, 1]} : vector<2x10xf32> to vector<2x1xf32>
    %247 = vector.broadcast %246 : vector<2x1xf32> to vector<2x40xf32>
    %248 = arith.mulf %247, %29 : vector<2x40xf32>
    %249 = vector.extract_strided_slice %229 {offsets = [0, 6], sizes = [2, 1], strides = [1, 1]} : vector<2x10xf32> to vector<2x1xf32>
    %250 = vector.broadcast %249 : vector<2x1xf32> to vector<2x40xf32>
    %251 = arith.mulf %250, %32 : vector<2x40xf32>
    %252 = vector.extract_strided_slice %229 {offsets = [0, 7], sizes = [2, 1], strides = [1, 1]} : vector<2x10xf32> to vector<2x1xf32>
    %253 = vector.broadcast %252 : vector<2x1xf32> to vector<2x40xf32>
    %254 = arith.mulf %253, %35 : vector<2x40xf32>
    %255 = vector.extract_strided_slice %229 {offsets = [0, 8], sizes = [2, 1], strides = [1, 1]} : vector<2x10xf32> to vector<2x1xf32>
    %256 = vector.broadcast %255 : vector<2x1xf32> to vector<2x40xf32>
    %257 = arith.mulf %256, %38 : vector<2x40xf32>
    %258 = vector.extract_strided_slice %229 {offsets = [0, 9], sizes = [2, 1], strides = [1, 1]} : vector<2x10xf32> to vector<2x1xf32>
    %259 = vector.broadcast %258 : vector<2x1xf32> to vector<2x40xf32>
    %260 = arith.mulf %259, %41 : vector<2x40xf32>
    %261 = arith.addf %95, %233 : vector<2x40xf32>
    %262 = arith.addf %236, %239 : vector<2x40xf32>
    %263 = arith.addf %242, %245 : vector<2x40xf32>
    %264 = arith.addf %248, %251 : vector<2x40xf32>
    %265 = arith.addf %254, %257 : vector<2x40xf32>
    %266 = arith.addf %261, %262 : vector<2x40xf32>
    %267 = arith.addf %263, %264 : vector<2x40xf32>
    %268 = arith.addf %265, %260 : vector<2x40xf32>
    %269 = arith.addf %266, %267 : vector<2x40xf32>
    %270 = arith.addf %269, %268 : vector<2x40xf32>
    %271 = math.tanh %270 : vector<2x40xf32>
    %272 = vector.extract_strided_slice %271 {offsets = [0, 0], sizes = [2, 10], strides = [1, 1]} : vector<2x40xf32> to vector<2x10xf32>
    %cst_13 = arith.constant 5.000000e-01 : f32
    %273 = vector.broadcast %cst_13 : f32 to vector<2x10xf32>
    %274 = arith.mulf %273, %272 : vector<2x10xf32>
    %cst_14 = arith.constant 5.000000e-01 : f32
    %275 = vector.broadcast %cst_14 : f32 to vector<2x10xf32>
    %276 = arith.addf %274, %275 : vector<2x10xf32>
    %277 = vector.extract_strided_slice %271 {offsets = [0, 10], sizes = [2, 10], strides = [1, 1]} : vector<2x40xf32> to vector<2x10xf32>
    %cst_15 = arith.constant 5.000000e-01 : f32
    %278 = vector.broadcast %cst_15 : f32 to vector<2x10xf32>
    %279 = arith.mulf %278, %277 : vector<2x10xf32>
    %cst_16 = arith.constant 5.000000e-01 : f32
    %280 = vector.broadcast %cst_16 : f32 to vector<2x10xf32>
    %281 = arith.addf %279, %280 : vector<2x10xf32>
    %282 = vector.extract_strided_slice %271 {offsets = [0, 20], sizes = [2, 10], strides = [1, 1]} : vector<2x40xf32> to vector<2x10xf32>
    %283 = vector.extract_strided_slice %271 {offsets = [0, 30], sizes = [2, 10], strides = [1, 1]} : vector<2x40xf32> to vector<2x10xf32>
    %cst_17 = arith.constant 5.000000e-01 : f32
    %284 = vector.broadcast %cst_17 : f32 to vector<2x10xf32>
    %285 = arith.mulf %284, %283 : vector<2x10xf32>
    %cst_18 = arith.constant 5.000000e-01 : f32
    %286 = vector.broadcast %cst_18 : f32 to vector<2x10xf32>
    %287 = arith.addf %285, %286 : vector<2x10xf32>
    %288 = arith.mulf %281, %230 : vector<2x10xf32>
    %289 = arith.mulf %276, %282 : vector<2x10xf32>
    %290 = arith.addf %288, %289 : vector<2x10xf32>
    %291 = math.tanh %290 : vector<2x10xf32>
    %292 = arith.mulf %287, %291 : vector<2x10xf32>
    %293 = vector.extract_strided_slice %292 {offsets = [0, 0], sizes = [2, 1], strides = [1, 1]} : vector<2x10xf32> to vector<2x1xf32>
    %294 = vector.broadcast %293 : vector<2x1xf32> to vector<2x40xf32>
    %295 = arith.mulf %294, %14 : vector<2x40xf32>
    %296 = vector.extract_strided_slice %292 {offsets = [0, 1], sizes = [2, 1], strides = [1, 1]} : vector<2x10xf32> to vector<2x1xf32>
    %297 = vector.broadcast %296 : vector<2x1xf32> to vector<2x40xf32>
    %298 = arith.mulf %297, %17 : vector<2x40xf32>
    %299 = vector.extract_strided_slice %292 {offsets = [0, 2], sizes = [2, 1], strides = [1, 1]} : vector<2x10xf32> to vector<2x1xf32>
    %300 = vector.broadcast %299 : vector<2x1xf32> to vector<2x40xf32>
    %301 = arith.mulf %300, %20 : vector<2x40xf32>
    %302 = vector.extract_strided_slice %292 {offsets = [0, 3], sizes = [2, 1], strides = [1, 1]} : vector<2x10xf32> to vector<2x1xf32>
    %303 = vector.broadcast %302 : vector<2x1xf32> to vector<2x40xf32>
    %304 = arith.mulf %303, %23 : vector<2x40xf32>
    %305 = vector.extract_strided_slice %292 {offsets = [0, 4], sizes = [2, 1], strides = [1, 1]} : vector<2x10xf32> to vector<2x1xf32>
    %306 = vector.broadcast %305 : vector<2x1xf32> to vector<2x40xf32>
    %307 = arith.mulf %306, %26 : vector<2x40xf32>
    %308 = vector.extract_strided_slice %292 {offsets = [0, 5], sizes = [2, 1], strides = [1, 1]} : vector<2x10xf32> to vector<2x1xf32>
    %309 = vector.broadcast %308 : vector<2x1xf32> to vector<2x40xf32>
    %310 = arith.mulf %309, %29 : vector<2x40xf32>
    %311 = vector.extract_strided_slice %292 {offsets = [0, 6], sizes = [2, 1], strides = [1, 1]} : vector<2x10xf32> to vector<2x1xf32>
    %312 = vector.broadcast %311 : vector<2x1xf32> to vector<2x40xf32>
    %313 = arith.mulf %312, %32 : vector<2x40xf32>
    %314 = vector.extract_strided_slice %292 {offsets = [0, 7], sizes = [2, 1], strides = [1, 1]} : vector<2x10xf32> to vector<2x1xf32>
    %315 = vector.broadcast %314 : vector<2x1xf32> to vector<2x40xf32>
    %316 = arith.mulf %315, %35 : vector<2x40xf32>
    %317 = vector.extract_strided_slice %292 {offsets = [0, 8], sizes = [2, 1], strides = [1, 1]} : vector<2x10xf32> to vector<2x1xf32>
    %318 = vector.broadcast %317 : vector<2x1xf32> to vector<2x40xf32>
    %319 = arith.mulf %318, %38 : vector<2x40xf32>
    %320 = vector.extract_strided_slice %292 {offsets = [0, 9], sizes = [2, 1], strides = [1, 1]} : vector<2x10xf32> to vector<2x1xf32>
    %321 = vector.broadcast %320 : vector<2x1xf32> to vector<2x40xf32>
    %322 = arith.mulf %321, %41 : vector<2x40xf32>
    %323 = arith.addf %114, %295 : vector<2x40xf32>
    %324 = arith.addf %298, %301 : vector<2x40xf32>
    %325 = arith.addf %304, %307 : vector<2x40xf32>
    %326 = arith.addf %310, %313 : vector<2x40xf32>
    %327 = arith.addf %316, %319 : vector<2x40xf32>
    %328 = arith.addf %323, %324 : vector<2x40xf32>
    %329 = arith.addf %325, %326 : vector<2x40xf32>
    %330 = arith.addf %327, %322 : vector<2x40xf32>
    %331 = arith.addf %328, %329 : vector<2x40xf32>
    %332 = arith.addf %331, %330 : vector<2x40xf32>
    %333 = math.tanh %332 : vector<2x40xf32>
    %334 = vector.extract_strided_slice %333 {offsets = [0, 0], sizes = [2, 10], strides = [1, 1]} : vector<2x40xf32> to vector<2x10xf32>
    %cst_19 = arith.constant 5.000000e-01 : f32
    %335 = vector.broadcast %cst_19 : f32 to vector<2x10xf32>
    %336 = arith.mulf %335, %334 : vector<2x10xf32>
    %cst_20 = arith.constant 5.000000e-01 : f32
    %337 = vector.broadcast %cst_20 : f32 to vector<2x10xf32>
    %338 = arith.addf %336, %337 : vector<2x10xf32>
    %339 = vector.extract_strided_slice %333 {offsets = [0, 10], sizes = [2, 10], strides = [1, 1]} : vector<2x40xf32> to vector<2x10xf32>
    %cst_21 = arith.constant 5.000000e-01 : f32
    %340 = vector.broadcast %cst_21 : f32 to vector<2x10xf32>
    %341 = arith.mulf %340, %339 : vector<2x10xf32>
    %cst_22 = arith.constant 5.000000e-01 : f32
    %342 = vector.broadcast %cst_22 : f32 to vector<2x10xf32>
    %343 = arith.addf %341, %342 : vector<2x10xf32>
    %344 = vector.extract_strided_slice %333 {offsets = [0, 20], sizes = [2, 10], strides = [1, 1]} : vector<2x40xf32> to vector<2x10xf32>
    %345 = vector.extract_strided_slice %333 {offsets = [0, 30], sizes = [2, 10], strides = [1, 1]} : vector<2x40xf32> to vector<2x10xf32>
    %cst_23 = arith.constant 5.000000e-01 : f32
    %346 = vector.broadcast %cst_23 : f32 to vector<2x10xf32>
    %347 = arith.mulf %346, %345 : vector<2x10xf32>
    %cst_24 = arith.constant 5.000000e-01 : f32
    %348 = vector.broadcast %cst_24 : f32 to vector<2x10xf32>
    %349 = arith.addf %347, %348 : vector<2x10xf32>
    %350 = arith.mulf %343, %290 : vector<2x10xf32>
    %351 = arith.mulf %338, %344 : vector<2x10xf32>
    %352 = arith.addf %350, %351 : vector<2x10xf32>
    %353 = math.tanh %352 : vector<2x10xf32>
    %354 = arith.mulf %349, %353 : vector<2x10xf32>
    %355 = vector.extract_strided_slice %354 {offsets = [0, 0], sizes = [2, 1], strides = [1, 1]} : vector<2x10xf32> to vector<2x1xf32>
    %356 = vector.broadcast %355 : vector<2x1xf32> to vector<2x40xf32>
    %357 = arith.mulf %356, %14 : vector<2x40xf32>
    %358 = vector.extract_strided_slice %354 {offsets = [0, 1], sizes = [2, 1], strides = [1, 1]} : vector<2x10xf32> to vector<2x1xf32>
    %359 = vector.broadcast %358 : vector<2x1xf32> to vector<2x40xf32>
    %360 = arith.mulf %359, %17 : vector<2x40xf32>
    %361 = vector.extract_strided_slice %354 {offsets = [0, 2], sizes = [2, 1], strides = [1, 1]} : vector<2x10xf32> to vector<2x1xf32>
    %362 = vector.broadcast %361 : vector<2x1xf32> to vector<2x40xf32>
    %363 = arith.mulf %362, %20 : vector<2x40xf32>
    %364 = vector.extract_strided_slice %354 {offsets = [0, 3], sizes = [2, 1], strides = [1, 1]} : vector<2x10xf32> to vector<2x1xf32>
    %365 = vector.broadcast %364 : vector<2x1xf32> to vector<2x40xf32>
    %366 = arith.mulf %365, %23 : vector<2x40xf32>
    %367 = vector.extract_strided_slice %354 {offsets = [0, 4], sizes = [2, 1], strides = [1, 1]} : vector<2x10xf32> to vector<2x1xf32>
    %368 = vector.broadcast %367 : vector<2x1xf32> to vector<2x40xf32>
    %369 = arith.mulf %368, %26 : vector<2x40xf32>
    %370 = vector.extract_strided_slice %354 {offsets = [0, 5], sizes = [2, 1], strides = [1, 1]} : vector<2x10xf32> to vector<2x1xf32>
    %371 = vector.broadcast %370 : vector<2x1xf32> to vector<2x40xf32>
    %372 = arith.mulf %371, %29 : vector<2x40xf32>
    %373 = vector.extract_strided_slice %354 {offsets = [0, 6], sizes = [2, 1], strides = [1, 1]} : vector<2x10xf32> to vector<2x1xf32>
    %374 = vector.broadcast %373 : vector<2x1xf32> to vector<2x40xf32>
    %375 = arith.mulf %374, %32 : vector<2x40xf32>
    %376 = vector.extract_strided_slice %354 {offsets = [0, 7], sizes = [2, 1], strides = [1, 1]} : vector<2x10xf32> to vector<2x1xf32>
    %377 = vector.broadcast %376 : vector<2x1xf32> to vector<2x40xf32>
    %378 = arith.mulf %377, %35 : vector<2x40xf32>
    %379 = vector.extract_strided_slice %354 {offsets = [0, 8], sizes = [2, 1], strides = [1, 1]} : vector<2x10xf32> to vector<2x1xf32>
    %380 = vector.broadcast %379 : vector<2x1xf32> to vector<2x40xf32>
    %381 = arith.mulf %380, %38 : vector<2x40xf32>
    %382 = vector.extract_strided_slice %354 {offsets = [0, 9], sizes = [2, 1], strides = [1, 1]} : vector<2x10xf32> to vector<2x1xf32>
    %383 = vector.broadcast %382 : vector<2x1xf32> to vector<2x40xf32>
    %384 = arith.mulf %383, %41 : vector<2x40xf32>
    %385 = arith.addf %133, %357 : vector<2x40xf32>
    %386 = arith.addf %360, %363 : vector<2x40xf32>
    %387 = arith.addf %366, %369 : vector<2x40xf32>
    %388 = arith.addf %372, %375 : vector<2x40xf32>
    %389 = arith.addf %378, %381 : vector<2x40xf32>
    %390 = arith.addf %385, %386 : vector<2x40xf32>
    %391 = arith.addf %387, %388 : vector<2x40xf32>
    %392 = arith.addf %389, %384 : vector<2x40xf32>
    %393 = arith.addf %390, %391 : vector<2x40xf32>
    %394 = arith.addf %393, %392 : vector<2x40xf32>
    %395 = math.tanh %394 : vector<2x40xf32>
    %396 = vector.extract_strided_slice %395 {offsets = [0, 0], sizes = [2, 10], strides = [1, 1]} : vector<2x40xf32> to vector<2x10xf32>
    %cst_25 = arith.constant 5.000000e-01 : f32
    %397 = vector.broadcast %cst_25 : f32 to vector<2x10xf32>
    %398 = arith.mulf %397, %396 : vector<2x10xf32>
    %cst_26 = arith.constant 5.000000e-01 : f32
    %399 = vector.broadcast %cst_26 : f32 to vector<2x10xf32>
    %400 = arith.addf %398, %399 : vector<2x10xf32>
    %401 = vector.extract_strided_slice %395 {offsets = [0, 10], sizes = [2, 10], strides = [1, 1]} : vector<2x40xf32> to vector<2x10xf32>
    %cst_27 = arith.constant 5.000000e-01 : f32
    %402 = vector.broadcast %cst_27 : f32 to vector<2x10xf32>
    %403 = arith.mulf %402, %401 : vector<2x10xf32>
    %cst_28 = arith.constant 5.000000e-01 : f32
    %404 = vector.broadcast %cst_28 : f32 to vector<2x10xf32>
    %405 = arith.addf %403, %404 : vector<2x10xf32>
    %406 = vector.extract_strided_slice %395 {offsets = [0, 20], sizes = [2, 10], strides = [1, 1]} : vector<2x40xf32> to vector<2x10xf32>
    %407 = vector.extract_strided_slice %395 {offsets = [0, 30], sizes = [2, 10], strides = [1, 1]} : vector<2x40xf32> to vector<2x10xf32>
    %cst_29 = arith.constant 5.000000e-01 : f32
    %408 = vector.broadcast %cst_29 : f32 to vector<2x10xf32>
    %409 = arith.mulf %408, %407 : vector<2x10xf32>
    %cst_30 = arith.constant 5.000000e-01 : f32
    %410 = vector.broadcast %cst_30 : f32 to vector<2x10xf32>
    %411 = arith.addf %409, %410 : vector<2x10xf32>
    %412 = arith.mulf %405, %352 : vector<2x10xf32>
    %413 = arith.mulf %400, %406 : vector<2x10xf32>
    %414 = arith.addf %412, %413 : vector<2x10xf32>
    %415 = math.tanh %414 : vector<2x10xf32>
    %416 = arith.mulf %411, %415 : vector<2x10xf32>
    %417 = vector.extract_strided_slice %416 {offsets = [0, 0], sizes = [2, 1], strides = [1, 1]} : vector<2x10xf32> to vector<2x1xf32>
    %418 = vector.broadcast %417 : vector<2x1xf32> to vector<2x40xf32>
    %419 = arith.mulf %418, %14 : vector<2x40xf32>
    %420 = vector.extract_strided_slice %416 {offsets = [0, 1], sizes = [2, 1], strides = [1, 1]} : vector<2x10xf32> to vector<2x1xf32>
    %421 = vector.broadcast %420 : vector<2x1xf32> to vector<2x40xf32>
    %422 = arith.mulf %421, %17 : vector<2x40xf32>
    %423 = vector.extract_strided_slice %416 {offsets = [0, 2], sizes = [2, 1], strides = [1, 1]} : vector<2x10xf32> to vector<2x1xf32>
    %424 = vector.broadcast %423 : vector<2x1xf32> to vector<2x40xf32>
    %425 = arith.mulf %424, %20 : vector<2x40xf32>
    %426 = vector.extract_strided_slice %416 {offsets = [0, 3], sizes = [2, 1], strides = [1, 1]} : vector<2x10xf32> to vector<2x1xf32>
    %427 = vector.broadcast %426 : vector<2x1xf32> to vector<2x40xf32>
    %428 = arith.mulf %427, %23 : vector<2x40xf32>
    %429 = vector.extract_strided_slice %416 {offsets = [0, 4], sizes = [2, 1], strides = [1, 1]} : vector<2x10xf32> to vector<2x1xf32>
    %430 = vector.broadcast %429 : vector<2x1xf32> to vector<2x40xf32>
    %431 = arith.mulf %430, %26 : vector<2x40xf32>
    %432 = vector.extract_strided_slice %416 {offsets = [0, 5], sizes = [2, 1], strides = [1, 1]} : vector<2x10xf32> to vector<2x1xf32>
    %433 = vector.broadcast %432 : vector<2x1xf32> to vector<2x40xf32>
    %434 = arith.mulf %433, %29 : vector<2x40xf32>
    %435 = vector.extract_strided_slice %416 {offsets = [0, 6], sizes = [2, 1], strides = [1, 1]} : vector<2x10xf32> to vector<2x1xf32>
    %436 = vector.broadcast %435 : vector<2x1xf32> to vector<2x40xf32>
    %437 = arith.mulf %436, %32 : vector<2x40xf32>
    %438 = vector.extract_strided_slice %416 {offsets = [0, 7], sizes = [2, 1], strides = [1, 1]} : vector<2x10xf32> to vector<2x1xf32>
    %439 = vector.broadcast %438 : vector<2x1xf32> to vector<2x40xf32>
    %440 = arith.mulf %439, %35 : vector<2x40xf32>
    %441 = vector.extract_strided_slice %416 {offsets = [0, 8], sizes = [2, 1], strides = [1, 1]} : vector<2x10xf32> to vector<2x1xf32>
    %442 = vector.broadcast %441 : vector<2x1xf32> to vector<2x40xf32>
    %443 = arith.mulf %442, %38 : vector<2x40xf32>
    %444 = vector.extract_strided_slice %416 {offsets = [0, 9], sizes = [2, 1], strides = [1, 1]} : vector<2x10xf32> to vector<2x1xf32>
    %445 = vector.broadcast %444 : vector<2x1xf32> to vector<2x40xf32>
    %446 = arith.mulf %445, %41 : vector<2x40xf32>
    %447 = arith.addf %152, %419 : vector<2x40xf32>
    %448 = arith.addf %422, %425 : vector<2x40xf32>
    %449 = arith.addf %428, %431 : vector<2x40xf32>
    %450 = arith.addf %434, %437 : vector<2x40xf32>
    %451 = arith.addf %440, %443 : vector<2x40xf32>
    %452 = arith.addf %447, %448 : vector<2x40xf32>
    %453 = arith.addf %449, %450 : vector<2x40xf32>
    %454 = arith.addf %451, %446 : vector<2x40xf32>
    %455 = arith.addf %452, %453 : vector<2x40xf32>
    %456 = arith.addf %455, %454 : vector<2x40xf32>
    %457 = math.tanh %456 : vector<2x40xf32>
    %458 = vector.extract_strided_slice %457 {offsets = [0, 0], sizes = [2, 10], strides = [1, 1]} : vector<2x40xf32> to vector<2x10xf32>
    %cst_31 = arith.constant 5.000000e-01 : f32
    %459 = vector.broadcast %cst_31 : f32 to vector<2x10xf32>
    %460 = arith.mulf %459, %458 : vector<2x10xf32>
    %cst_32 = arith.constant 5.000000e-01 : f32
    %461 = vector.broadcast %cst_32 : f32 to vector<2x10xf32>
    %462 = arith.addf %460, %461 : vector<2x10xf32>
    %463 = vector.extract_strided_slice %457 {offsets = [0, 10], sizes = [2, 10], strides = [1, 1]} : vector<2x40xf32> to vector<2x10xf32>
    %cst_33 = arith.constant 5.000000e-01 : f32
    %464 = vector.broadcast %cst_33 : f32 to vector<2x10xf32>
    %465 = arith.mulf %464, %463 : vector<2x10xf32>
    %cst_34 = arith.constant 5.000000e-01 : f32
    %466 = vector.broadcast %cst_34 : f32 to vector<2x10xf32>
    %467 = arith.addf %465, %466 : vector<2x10xf32>
    %468 = vector.extract_strided_slice %457 {offsets = [0, 20], sizes = [2, 10], strides = [1, 1]} : vector<2x40xf32> to vector<2x10xf32>
    %469 = vector.extract_strided_slice %457 {offsets = [0, 30], sizes = [2, 10], strides = [1, 1]} : vector<2x40xf32> to vector<2x10xf32>
    %cst_35 = arith.constant 5.000000e-01 : f32
    %470 = vector.broadcast %cst_35 : f32 to vector<2x10xf32>
    %471 = arith.mulf %470, %469 : vector<2x10xf32>
    %cst_36 = arith.constant 5.000000e-01 : f32
    %472 = vector.broadcast %cst_36 : f32 to vector<2x10xf32>
    %473 = arith.addf %471, %472 : vector<2x10xf32>
    %474 = arith.mulf %467, %414 : vector<2x10xf32>
    %475 = arith.mulf %462, %468 : vector<2x10xf32>
    %476 = arith.addf %474, %475 : vector<2x10xf32>
    %477 = math.tanh %476 : vector<2x10xf32>
    %478 = arith.mulf %473, %477 : vector<2x10xf32>
    %479 = vector.extract_strided_slice %478 {offsets = [0, 0], sizes = [2, 1], strides = [1, 1]} : vector<2x10xf32> to vector<2x1xf32>
    %480 = vector.broadcast %479 : vector<2x1xf32> to vector<2x40xf32>
    %481 = arith.mulf %480, %14 : vector<2x40xf32>
    %482 = vector.extract_strided_slice %478 {offsets = [0, 1], sizes = [2, 1], strides = [1, 1]} : vector<2x10xf32> to vector<2x1xf32>
    %483 = vector.broadcast %482 : vector<2x1xf32> to vector<2x40xf32>
    %484 = arith.mulf %483, %17 : vector<2x40xf32>
    %485 = vector.extract_strided_slice %478 {offsets = [0, 2], sizes = [2, 1], strides = [1, 1]} : vector<2x10xf32> to vector<2x1xf32>
    %486 = vector.broadcast %485 : vector<2x1xf32> to vector<2x40xf32>
    %487 = arith.mulf %486, %20 : vector<2x40xf32>
    %488 = vector.extract_strided_slice %478 {offsets = [0, 3], sizes = [2, 1], strides = [1, 1]} : vector<2x10xf32> to vector<2x1xf32>
    %489 = vector.broadcast %488 : vector<2x1xf32> to vector<2x40xf32>
    %490 = arith.mulf %489, %23 : vector<2x40xf32>
    %491 = vector.extract_strided_slice %478 {offsets = [0, 4], sizes = [2, 1], strides = [1, 1]} : vector<2x10xf32> to vector<2x1xf32>
    %492 = vector.broadcast %491 : vector<2x1xf32> to vector<2x40xf32>
    %493 = arith.mulf %492, %26 : vector<2x40xf32>
    %494 = vector.extract_strided_slice %478 {offsets = [0, 5], sizes = [2, 1], strides = [1, 1]} : vector<2x10xf32> to vector<2x1xf32>
    %495 = vector.broadcast %494 : vector<2x1xf32> to vector<2x40xf32>
    %496 = arith.mulf %495, %29 : vector<2x40xf32>
    %497 = vector.extract_strided_slice %478 {offsets = [0, 6], sizes = [2, 1], strides = [1, 1]} : vector<2x10xf32> to vector<2x1xf32>
    %498 = vector.broadcast %497 : vector<2x1xf32> to vector<2x40xf32>
    %499 = arith.mulf %498, %32 : vector<2x40xf32>
    %500 = vector.extract_strided_slice %478 {offsets = [0, 7], sizes = [2, 1], strides = [1, 1]} : vector<2x10xf32> to vector<2x1xf32>
    %501 = vector.broadcast %500 : vector<2x1xf32> to vector<2x40xf32>
    %502 = arith.mulf %501, %35 : vector<2x40xf32>
    %503 = vector.extract_strided_slice %478 {offsets = [0, 8], sizes = [2, 1], strides = [1, 1]} : vector<2x10xf32> to vector<2x1xf32>
    %504 = vector.broadcast %503 : vector<2x1xf32> to vector<2x40xf32>
    %505 = arith.mulf %504, %38 : vector<2x40xf32>
    %506 = vector.extract_strided_slice %478 {offsets = [0, 9], sizes = [2, 1], strides = [1, 1]} : vector<2x10xf32> to vector<2x1xf32>
    %507 = vector.broadcast %506 : vector<2x1xf32> to vector<2x40xf32>
    %508 = arith.mulf %507, %41 : vector<2x40xf32>
    %509 = arith.addf %171, %481 : vector<2x40xf32>
    %510 = arith.addf %484, %487 : vector<2x40xf32>
    %511 = arith.addf %490, %493 : vector<2x40xf32>
    %512 = arith.addf %496, %499 : vector<2x40xf32>
    %513 = arith.addf %502, %505 : vector<2x40xf32>
    %514 = arith.addf %509, %510 : vector<2x40xf32>
    %515 = arith.addf %511, %512 : vector<2x40xf32>
    %516 = arith.addf %513, %508 : vector<2x40xf32>
    %517 = arith.addf %514, %515 : vector<2x40xf32>
    %518 = arith.addf %517, %516 : vector<2x40xf32>
    %519 = math.tanh %518 : vector<2x40xf32>
    %520 = vector.extract_strided_slice %519 {offsets = [0, 0], sizes = [2, 10], strides = [1, 1]} : vector<2x40xf32> to vector<2x10xf32>
    %cst_37 = arith.constant 5.000000e-01 : f32
    %521 = vector.broadcast %cst_37 : f32 to vector<2x10xf32>
    %522 = arith.mulf %521, %520 : vector<2x10xf32>
    %cst_38 = arith.constant 5.000000e-01 : f32
    %523 = vector.broadcast %cst_38 : f32 to vector<2x10xf32>
    %524 = arith.addf %522, %523 : vector<2x10xf32>
    %525 = vector.extract_strided_slice %519 {offsets = [0, 10], sizes = [2, 10], strides = [1, 1]} : vector<2x40xf32> to vector<2x10xf32>
    %cst_39 = arith.constant 5.000000e-01 : f32
    %526 = vector.broadcast %cst_39 : f32 to vector<2x10xf32>
    %527 = arith.mulf %526, %525 : vector<2x10xf32>
    %cst_40 = arith.constant 5.000000e-01 : f32
    %528 = vector.broadcast %cst_40 : f32 to vector<2x10xf32>
    %529 = arith.addf %527, %528 : vector<2x10xf32>
    %530 = vector.extract_strided_slice %519 {offsets = [0, 20], sizes = [2, 10], strides = [1, 1]} : vector<2x40xf32> to vector<2x10xf32>
    %531 = vector.extract_strided_slice %519 {offsets = [0, 30], sizes = [2, 10], strides = [1, 1]} : vector<2x40xf32> to vector<2x10xf32>
    %cst_41 = arith.constant 5.000000e-01 : f32
    %532 = vector.broadcast %cst_41 : f32 to vector<2x10xf32>
    %533 = arith.mulf %532, %531 : vector<2x10xf32>
    %cst_42 = arith.constant 5.000000e-01 : f32
    %534 = vector.broadcast %cst_42 : f32 to vector<2x10xf32>
    %535 = arith.addf %533, %534 : vector<2x10xf32>
    %536 = arith.mulf %529, %476 : vector<2x10xf32>
    %537 = arith.mulf %524, %530 : vector<2x10xf32>
    %538 = arith.addf %536, %537 : vector<2x10xf32>
    %539 = math.tanh %538 : vector<2x10xf32>
    %540 = arith.mulf %535, %539 : vector<2x10xf32>
    %541 = vector.extract_strided_slice %540 {offsets = [0, 0], sizes = [2, 1], strides = [1, 1]} : vector<2x10xf32> to vector<2x1xf32>
    %542 = vector.broadcast %541 : vector<2x1xf32> to vector<2x40xf32>
    %543 = arith.mulf %542, %14 : vector<2x40xf32>
    %544 = vector.extract_strided_slice %540 {offsets = [0, 1], sizes = [2, 1], strides = [1, 1]} : vector<2x10xf32> to vector<2x1xf32>
    %545 = vector.broadcast %544 : vector<2x1xf32> to vector<2x40xf32>
    %546 = arith.mulf %545, %17 : vector<2x40xf32>
    %547 = vector.extract_strided_slice %540 {offsets = [0, 2], sizes = [2, 1], strides = [1, 1]} : vector<2x10xf32> to vector<2x1xf32>
    %548 = vector.broadcast %547 : vector<2x1xf32> to vector<2x40xf32>
    %549 = arith.mulf %548, %20 : vector<2x40xf32>
    %550 = vector.extract_strided_slice %540 {offsets = [0, 3], sizes = [2, 1], strides = [1, 1]} : vector<2x10xf32> to vector<2x1xf32>
    %551 = vector.broadcast %550 : vector<2x1xf32> to vector<2x40xf32>
    %552 = arith.mulf %551, %23 : vector<2x40xf32>
    %553 = vector.extract_strided_slice %540 {offsets = [0, 4], sizes = [2, 1], strides = [1, 1]} : vector<2x10xf32> to vector<2x1xf32>
    %554 = vector.broadcast %553 : vector<2x1xf32> to vector<2x40xf32>
    %555 = arith.mulf %554, %26 : vector<2x40xf32>
    %556 = vector.extract_strided_slice %540 {offsets = [0, 5], sizes = [2, 1], strides = [1, 1]} : vector<2x10xf32> to vector<2x1xf32>
    %557 = vector.broadcast %556 : vector<2x1xf32> to vector<2x40xf32>
    %558 = arith.mulf %557, %29 : vector<2x40xf32>
    %559 = vector.extract_strided_slice %540 {offsets = [0, 6], sizes = [2, 1], strides = [1, 1]} : vector<2x10xf32> to vector<2x1xf32>
    %560 = vector.broadcast %559 : vector<2x1xf32> to vector<2x40xf32>
    %561 = arith.mulf %560, %32 : vector<2x40xf32>
    %562 = vector.extract_strided_slice %540 {offsets = [0, 7], sizes = [2, 1], strides = [1, 1]} : vector<2x10xf32> to vector<2x1xf32>
    %563 = vector.broadcast %562 : vector<2x1xf32> to vector<2x40xf32>
    %564 = arith.mulf %563, %35 : vector<2x40xf32>
    %565 = vector.extract_strided_slice %540 {offsets = [0, 8], sizes = [2, 1], strides = [1, 1]} : vector<2x10xf32> to vector<2x1xf32>
    %566 = vector.broadcast %565 : vector<2x1xf32> to vector<2x40xf32>
    %567 = arith.mulf %566, %38 : vector<2x40xf32>
    %568 = vector.extract_strided_slice %540 {offsets = [0, 9], sizes = [2, 1], strides = [1, 1]} : vector<2x10xf32> to vector<2x1xf32>
    %569 = vector.broadcast %568 : vector<2x1xf32> to vector<2x40xf32>
    %570 = arith.mulf %569, %41 : vector<2x40xf32>
    %571 = arith.addf %190, %543 : vector<2x40xf32>
    %572 = arith.addf %546, %549 : vector<2x40xf32>
    %573 = arith.addf %552, %555 : vector<2x40xf32>
    %574 = arith.addf %558, %561 : vector<2x40xf32>
    %575 = arith.addf %564, %567 : vector<2x40xf32>
    %576 = arith.addf %571, %572 : vector<2x40xf32>
    %577 = arith.addf %573, %574 : vector<2x40xf32>
    %578 = arith.addf %575, %570 : vector<2x40xf32>
    %579 = arith.addf %576, %577 : vector<2x40xf32>
    %580 = arith.addf %579, %578 : vector<2x40xf32>
    %581 = math.tanh %580 : vector<2x40xf32>
    %582 = vector.extract_strided_slice %581 {offsets = [0, 0], sizes = [2, 10], strides = [1, 1]} : vector<2x40xf32> to vector<2x10xf32>
    %cst_43 = arith.constant 5.000000e-01 : f32
    %583 = vector.broadcast %cst_43 : f32 to vector<2x10xf32>
    %584 = arith.mulf %583, %582 : vector<2x10xf32>
    %cst_44 = arith.constant 5.000000e-01 : f32
    %585 = vector.broadcast %cst_44 : f32 to vector<2x10xf32>
    %586 = arith.addf %584, %585 : vector<2x10xf32>
    %587 = vector.extract_strided_slice %581 {offsets = [0, 10], sizes = [2, 10], strides = [1, 1]} : vector<2x40xf32> to vector<2x10xf32>
    %cst_45 = arith.constant 5.000000e-01 : f32
    %588 = vector.broadcast %cst_45 : f32 to vector<2x10xf32>
    %589 = arith.mulf %588, %587 : vector<2x10xf32>
    %cst_46 = arith.constant 5.000000e-01 : f32
    %590 = vector.broadcast %cst_46 : f32 to vector<2x10xf32>
    %591 = arith.addf %589, %590 : vector<2x10xf32>
    %592 = vector.extract_strided_slice %581 {offsets = [0, 20], sizes = [2, 10], strides = [1, 1]} : vector<2x40xf32> to vector<2x10xf32>
    %593 = vector.extract_strided_slice %581 {offsets = [0, 30], sizes = [2, 10], strides = [1, 1]} : vector<2x40xf32> to vector<2x10xf32>
    %cst_47 = arith.constant 5.000000e-01 : f32
    %594 = vector.broadcast %cst_47 : f32 to vector<2x10xf32>
    %595 = arith.mulf %594, %593 : vector<2x10xf32>
    %cst_48 = arith.constant 5.000000e-01 : f32
    %596 = vector.broadcast %cst_48 : f32 to vector<2x10xf32>
    %597 = arith.addf %595, %596 : vector<2x10xf32>
    %598 = arith.mulf %591, %538 : vector<2x10xf32>
    %599 = arith.mulf %586, %592 : vector<2x10xf32>
    %600 = arith.addf %598, %599 : vector<2x10xf32>
    %601 = math.tanh %600 : vector<2x10xf32>
    %602 = arith.mulf %597, %601 : vector<2x10xf32>
    %603 = vector.extract_strided_slice %602 {offsets = [0, 0], sizes = [2, 1], strides = [1, 1]} : vector<2x10xf32> to vector<2x1xf32>
    %604 = vector.broadcast %603 : vector<2x1xf32> to vector<2x40xf32>
    %605 = arith.mulf %604, %14 : vector<2x40xf32>
    %606 = vector.extract_strided_slice %602 {offsets = [0, 1], sizes = [2, 1], strides = [1, 1]} : vector<2x10xf32> to vector<2x1xf32>
    %607 = vector.broadcast %606 : vector<2x1xf32> to vector<2x40xf32>
    %608 = arith.mulf %607, %17 : vector<2x40xf32>
    %609 = vector.extract_strided_slice %602 {offsets = [0, 2], sizes = [2, 1], strides = [1, 1]} : vector<2x10xf32> to vector<2x1xf32>
    %610 = vector.broadcast %609 : vector<2x1xf32> to vector<2x40xf32>
    %611 = arith.mulf %610, %20 : vector<2x40xf32>
    %612 = vector.extract_strided_slice %602 {offsets = [0, 3], sizes = [2, 1], strides = [1, 1]} : vector<2x10xf32> to vector<2x1xf32>
    %613 = vector.broadcast %612 : vector<2x1xf32> to vector<2x40xf32>
    %614 = arith.mulf %613, %23 : vector<2x40xf32>
    %615 = vector.extract_strided_slice %602 {offsets = [0, 4], sizes = [2, 1], strides = [1, 1]} : vector<2x10xf32> to vector<2x1xf32>
    %616 = vector.broadcast %615 : vector<2x1xf32> to vector<2x40xf32>
    %617 = arith.mulf %616, %26 : vector<2x40xf32>
    %618 = vector.extract_strided_slice %602 {offsets = [0, 5], sizes = [2, 1], strides = [1, 1]} : vector<2x10xf32> to vector<2x1xf32>
    %619 = vector.broadcast %618 : vector<2x1xf32> to vector<2x40xf32>
    %620 = arith.mulf %619, %29 : vector<2x40xf32>
    %621 = vector.extract_strided_slice %602 {offsets = [0, 6], sizes = [2, 1], strides = [1, 1]} : vector<2x10xf32> to vector<2x1xf32>
    %622 = vector.broadcast %621 : vector<2x1xf32> to vector<2x40xf32>
    %623 = arith.mulf %622, %32 : vector<2x40xf32>
    %624 = vector.extract_strided_slice %602 {offsets = [0, 7], sizes = [2, 1], strides = [1, 1]} : vector<2x10xf32> to vector<2x1xf32>
    %625 = vector.broadcast %624 : vector<2x1xf32> to vector<2x40xf32>
    %626 = arith.mulf %625, %35 : vector<2x40xf32>
    %627 = vector.extract_strided_slice %602 {offsets = [0, 8], sizes = [2, 1], strides = [1, 1]} : vector<2x10xf32> to vector<2x1xf32>
    %628 = vector.broadcast %627 : vector<2x1xf32> to vector<2x40xf32>
    %629 = arith.mulf %628, %38 : vector<2x40xf32>
    %630 = vector.extract_strided_slice %602 {offsets = [0, 9], sizes = [2, 1], strides = [1, 1]} : vector<2x10xf32> to vector<2x1xf32>
    %631 = vector.broadcast %630 : vector<2x1xf32> to vector<2x40xf32>
    %632 = arith.mulf %631, %41 : vector<2x40xf32>
    %633 = arith.addf %209, %605 : vector<2x40xf32>
    %634 = arith.addf %608, %611 : vector<2x40xf32>
    %635 = arith.addf %614, %617 : vector<2x40xf32>
    %636 = arith.addf %620, %623 : vector<2x40xf32>
    %637 = arith.addf %626, %629 : vector<2x40xf32>
    %638 = arith.addf %633, %634 : vector<2x40xf32>
    %639 = arith.addf %635, %636 : vector<2x40xf32>
    %640 = arith.addf %637, %632 : vector<2x40xf32>
    %641 = arith.addf %638, %639 : vector<2x40xf32>
    %642 = arith.addf %641, %640 : vector<2x40xf32>
    %643 = math.tanh %642 : vector<2x40xf32>
    %644 = vector.extract_strided_slice %643 {offsets = [0, 0], sizes = [2, 10], strides = [1, 1]} : vector<2x40xf32> to vector<2x10xf32>
    %cst_49 = arith.constant 5.000000e-01 : f32
    %645 = vector.broadcast %cst_49 : f32 to vector<2x10xf32>
    %646 = arith.mulf %645, %644 : vector<2x10xf32>
    %cst_50 = arith.constant 5.000000e-01 : f32
    %647 = vector.broadcast %cst_50 : f32 to vector<2x10xf32>
    %648 = arith.addf %646, %647 : vector<2x10xf32>
    %649 = vector.extract_strided_slice %643 {offsets = [0, 10], sizes = [2, 10], strides = [1, 1]} : vector<2x40xf32> to vector<2x10xf32>
    %cst_51 = arith.constant 5.000000e-01 : f32
    %650 = vector.broadcast %cst_51 : f32 to vector<2x10xf32>
    %651 = arith.mulf %650, %649 : vector<2x10xf32>
    %cst_52 = arith.constant 5.000000e-01 : f32
    %652 = vector.broadcast %cst_52 : f32 to vector<2x10xf32>
    %653 = arith.addf %651, %652 : vector<2x10xf32>
    %654 = vector.extract_strided_slice %643 {offsets = [0, 20], sizes = [2, 10], strides = [1, 1]} : vector<2x40xf32> to vector<2x10xf32>
    %655 = vector.extract_strided_slice %643 {offsets = [0, 30], sizes = [2, 10], strides = [1, 1]} : vector<2x40xf32> to vector<2x10xf32>
    %cst_53 = arith.constant 5.000000e-01 : f32
    %656 = vector.broadcast %cst_53 : f32 to vector<2x10xf32>
    %657 = arith.mulf %656, %655 : vector<2x10xf32>
    %cst_54 = arith.constant 5.000000e-01 : f32
    %658 = vector.broadcast %cst_54 : f32 to vector<2x10xf32>
    %659 = arith.addf %657, %658 : vector<2x10xf32>
    %660 = arith.mulf %653, %600 : vector<2x10xf32>
    %661 = arith.mulf %648, %654 : vector<2x10xf32>
    %662 = arith.addf %660, %661 : vector<2x10xf32>
    %663 = math.tanh %662 : vector<2x10xf32>
    %664 = arith.mulf %659, %663 : vector<2x10xf32>
    %665 = vector.extract_strided_slice %664 {offsets = [0, 0], sizes = [2, 1], strides = [1, 1]} : vector<2x10xf32> to vector<2x1xf32>
    %666 = vector.broadcast %665 : vector<2x1xf32> to vector<2x40xf32>
    %667 = arith.mulf %666, %14 : vector<2x40xf32>
    %668 = vector.extract_strided_slice %664 {offsets = [0, 1], sizes = [2, 1], strides = [1, 1]} : vector<2x10xf32> to vector<2x1xf32>
    %669 = vector.broadcast %668 : vector<2x1xf32> to vector<2x40xf32>
    %670 = arith.mulf %669, %17 : vector<2x40xf32>
    %671 = vector.extract_strided_slice %664 {offsets = [0, 2], sizes = [2, 1], strides = [1, 1]} : vector<2x10xf32> to vector<2x1xf32>
    %672 = vector.broadcast %671 : vector<2x1xf32> to vector<2x40xf32>
    %673 = arith.mulf %672, %20 : vector<2x40xf32>
    %674 = vector.extract_strided_slice %664 {offsets = [0, 3], sizes = [2, 1], strides = [1, 1]} : vector<2x10xf32> to vector<2x1xf32>
    %675 = vector.broadcast %674 : vector<2x1xf32> to vector<2x40xf32>
    %676 = arith.mulf %675, %23 : vector<2x40xf32>
    %677 = vector.extract_strided_slice %664 {offsets = [0, 4], sizes = [2, 1], strides = [1, 1]} : vector<2x10xf32> to vector<2x1xf32>
    %678 = vector.broadcast %677 : vector<2x1xf32> to vector<2x40xf32>
    %679 = arith.mulf %678, %26 : vector<2x40xf32>
    %680 = vector.extract_strided_slice %664 {offsets = [0, 5], sizes = [2, 1], strides = [1, 1]} : vector<2x10xf32> to vector<2x1xf32>
    %681 = vector.broadcast %680 : vector<2x1xf32> to vector<2x40xf32>
    %682 = arith.mulf %681, %29 : vector<2x40xf32>
    %683 = vector.extract_strided_slice %664 {offsets = [0, 6], sizes = [2, 1], strides = [1, 1]} : vector<2x10xf32> to vector<2x1xf32>
    %684 = vector.broadcast %683 : vector<2x1xf32> to vector<2x40xf32>
    %685 = arith.mulf %684, %32 : vector<2x40xf32>
    %686 = vector.extract_strided_slice %664 {offsets = [0, 7], sizes = [2, 1], strides = [1, 1]} : vector<2x10xf32> to vector<2x1xf32>
    %687 = vector.broadcast %686 : vector<2x1xf32> to vector<2x40xf32>
    %688 = arith.mulf %687, %35 : vector<2x40xf32>
    %689 = vector.extract_strided_slice %664 {offsets = [0, 8], sizes = [2, 1], strides = [1, 1]} : vector<2x10xf32> to vector<2x1xf32>
    %690 = vector.broadcast %689 : vector<2x1xf32> to vector<2x40xf32>
    %691 = arith.mulf %690, %38 : vector<2x40xf32>
    %692 = vector.extract_strided_slice %664 {offsets = [0, 9], sizes = [2, 1], strides = [1, 1]} : vector<2x10xf32> to vector<2x1xf32>
    %693 = vector.broadcast %692 : vector<2x1xf32> to vector<2x40xf32>
    %694 = arith.mulf %693, %41 : vector<2x40xf32>
    %695 = arith.addf %228, %667 : vector<2x40xf32>
    %696 = arith.addf %670, %673 : vector<2x40xf32>
    %697 = arith.addf %676, %679 : vector<2x40xf32>
    %698 = arith.addf %682, %685 : vector<2x40xf32>
    %699 = arith.addf %688, %691 : vector<2x40xf32>
    %700 = arith.addf %695, %696 : vector<2x40xf32>
    %701 = arith.addf %697, %698 : vector<2x40xf32>
    %702 = arith.addf %699, %694 : vector<2x40xf32>
    %703 = arith.addf %700, %701 : vector<2x40xf32>
    %704 = arith.addf %703, %702 : vector<2x40xf32>
    %705 = math.tanh %704 : vector<2x40xf32>
    %706 = vector.extract_strided_slice %705 {offsets = [0, 0], sizes = [2, 10], strides = [1, 1]} : vector<2x40xf32> to vector<2x10xf32>
    %cst_55 = arith.constant 5.000000e-01 : f32
    %707 = vector.broadcast %cst_55 : f32 to vector<2x10xf32>
    %708 = arith.mulf %707, %706 : vector<2x10xf32>
    %cst_56 = arith.constant 5.000000e-01 : f32
    %709 = vector.broadcast %cst_56 : f32 to vector<2x10xf32>
    %710 = arith.addf %708, %709 : vector<2x10xf32>
    %711 = vector.extract_strided_slice %705 {offsets = [0, 10], sizes = [2, 10], strides = [1, 1]} : vector<2x40xf32> to vector<2x10xf32>
    %cst_57 = arith.constant 5.000000e-01 : f32
    %712 = vector.broadcast %cst_57 : f32 to vector<2x10xf32>
    %713 = arith.mulf %712, %711 : vector<2x10xf32>
    %cst_58 = arith.constant 5.000000e-01 : f32
    %714 = vector.broadcast %cst_58 : f32 to vector<2x10xf32>
    %715 = arith.addf %713, %714 : vector<2x10xf32>
    %716 = vector.extract_strided_slice %705 {offsets = [0, 20], sizes = [2, 10], strides = [1, 1]} : vector<2x40xf32> to vector<2x10xf32>
    %717 = vector.extract_strided_slice %705 {offsets = [0, 30], sizes = [2, 10], strides = [1, 1]} : vector<2x40xf32> to vector<2x10xf32>
    %cst_59 = arith.constant 5.000000e-01 : f32
    %718 = vector.broadcast %cst_59 : f32 to vector<2x10xf32>
    %719 = arith.mulf %718, %717 : vector<2x10xf32>
    %cst_60 = arith.constant 5.000000e-01 : f32
    %720 = vector.broadcast %cst_60 : f32 to vector<2x10xf32>
    %721 = arith.addf %719, %720 : vector<2x10xf32>
    %722 = arith.mulf %715, %662 : vector<2x10xf32>
    %723 = arith.mulf %710, %716 : vector<2x10xf32>
    %724 = arith.addf %722, %723 : vector<2x10xf32>
    %725 = math.tanh %724 : vector<2x10xf32>
    %726 = arith.mulf %721, %725 : vector<2x10xf32>
    %727 = vector.extract_strided_slice %726 {offsets = [0, 0], sizes = [2, 1], strides = [1, 1]} : vector<2x10xf32> to vector<2x1xf32>
    %728 = vector.broadcast %727 : vector<2x1xf32> to vector<2x3xf32>
    %729 = arith.mulf %728, %44 : vector<2x3xf32>
    %730 = vector.extract_strided_slice %726 {offsets = [0, 1], sizes = [2, 1], strides = [1, 1]} : vector<2x10xf32> to vector<2x1xf32>
    %731 = vector.broadcast %730 : vector<2x1xf32> to vector<2x3xf32>
    %732 = arith.mulf %731, %47 : vector<2x3xf32>
    %733 = vector.extract_strided_slice %726 {offsets = [0, 2], sizes = [2, 1], strides = [1, 1]} : vector<2x10xf32> to vector<2x1xf32>
    %734 = vector.broadcast %733 : vector<2x1xf32> to vector<2x3xf32>
    %735 = arith.mulf %734, %50 : vector<2x3xf32>
    %736 = vector.extract_strided_slice %726 {offsets = [0, 3], sizes = [2, 1], strides = [1, 1]} : vector<2x10xf32> to vector<2x1xf32>
    %737 = vector.broadcast %736 : vector<2x1xf32> to vector<2x3xf32>
    %738 = arith.mulf %737, %53 : vector<2x3xf32>
    %739 = vector.extract_strided_slice %726 {offsets = [0, 4], sizes = [2, 1], strides = [1, 1]} : vector<2x10xf32> to vector<2x1xf32>
    %740 = vector.broadcast %739 : vector<2x1xf32> to vector<2x3xf32>
    %741 = arith.mulf %740, %56 : vector<2x3xf32>
    %742 = vector.extract_strided_slice %726 {offsets = [0, 5], sizes = [2, 1], strides = [1, 1]} : vector<2x10xf32> to vector<2x1xf32>
    %743 = vector.broadcast %742 : vector<2x1xf32> to vector<2x3xf32>
    %744 = arith.mulf %743, %59 : vector<2x3xf32>
    %745 = vector.extract_strided_slice %726 {offsets = [0, 6], sizes = [2, 1], strides = [1, 1]} : vector<2x10xf32> to vector<2x1xf32>
    %746 = vector.broadcast %745 : vector<2x1xf32> to vector<2x3xf32>
    %747 = arith.mulf %746, %62 : vector<2x3xf32>
    %748 = vector.extract_strided_slice %726 {offsets = [0, 7], sizes = [2, 1], strides = [1, 1]} : vector<2x10xf32> to vector<2x1xf32>
    %749 = vector.broadcast %748 : vector<2x1xf32> to vector<2x3xf32>
    %750 = arith.mulf %749, %65 : vector<2x3xf32>
    %751 = vector.extract_strided_slice %726 {offsets = [0, 8], sizes = [2, 1], strides = [1, 1]} : vector<2x10xf32> to vector<2x1xf32>
    %752 = vector.broadcast %751 : vector<2x1xf32> to vector<2x3xf32>
    %753 = arith.mulf %752, %68 : vector<2x3xf32>
    %754 = vector.extract_strided_slice %726 {offsets = [0, 9], sizes = [2, 1], strides = [1, 1]} : vector<2x10xf32> to vector<2x1xf32>
    %755 = vector.broadcast %754 : vector<2x1xf32> to vector<2x3xf32>
    %756 = arith.mulf %755, %71 : vector<2x3xf32>
    %757 = arith.addf %11, %729 : vector<2x3xf32>
    %758 = arith.addf %732, %735 : vector<2x3xf32>
    %759 = arith.addf %738, %741 : vector<2x3xf32>
    %760 = arith.addf %744, %747 : vector<2x3xf32>
    %761 = arith.addf %750, %753 : vector<2x3xf32>
    %762 = arith.addf %757, %758 : vector<2x3xf32>
    %763 = arith.addf %759, %760 : vector<2x3xf32>
    %764 = arith.addf %761, %756 : vector<2x3xf32>
    %765 = arith.addf %762, %763 : vector<2x3xf32>
    %766 = arith.addf %765, %764 : vector<2x3xf32>
    %c0_61 = arith.constant 0 : index
    %c0_62 = arith.constant 0 : index
    %767 = vector.load %arg3[%c0_61, %c0_62] : memref<2x3xf32, #tpu.memory_space<vmem>>, vector<2x3xf32>
    tpu.vector_store %arg3[%c0_61, %c0_62], %766 {strides = array<i32>} : memref<2x3xf32, #tpu.memory_space<vmem>>, vector<2x3xf32>,
    return
  }
}

</mosaic_0001>

<bundles_post_ra>
// kernel: tpu_custom_call.1
= control target key start
LH: loop header
LB: loop body
LE: loop exit
PB: predicated region body
PF: predicated region fallthrough
CT: control target
= control target key end

     0   :  { %8 = vsyncpa [#allocation5], 0  ;;  %s1448_s0 = inlined_call_operand.hbm [shape: f32[4], index: 0, kind: input, shape index: {}]   ;;  %s1449_s1 = inlined_call_operand.hbm [shape: f32[2,24], index: 1, kind: input, shape index: {}]   ;;  %s1450_s2 = inlined_call_operand.hbm [shape: f32[16,128], index: 2, kind: input, shape index: {}]   ;;  %s1451_s3 = inlined_call_operand.hbm [shape: f32[2,3], index: 3, kind: output, shape index: {}]  }
   0x1   :  { %9 = vsyncpa [#allocation3], 0 }
   0x2   :  { %10 = vsyncpa [#allocation8], 0 }
   0x3   :  { %11 = vsyncpa [#allocation4], 0  ;;  %s1100_s12 = smov [#allocation2]   ;;  %s1101_s15 = smov [#allocation6]  }
   0x4   :  { %19 = dma.hbm_to_smem %s1448_s0, 16, %s1100_s12, [#allocation5]  }
   0x5   :  { %s26_s16 = sshll.u32 %s1101_s15, 4  ;;  %s1102_s17 = smov [#allocation7]   ;;  %s27_s16 = int_to_ptr.vmem [resolvable:$true] %s26_s16 }
   0x6   :  { %s35_s18 = sshll.u32 %s1102_s17, 4  ;;  %s1040_s19 = scalar_lea.vmem %s27_s16, 32  ;;  %s36_s18 = int_to_ptr.vmem [resolvable:$true] %s35_s18 }
   0x7   :  { %p1041_p0 = scmp.ne.s32.totalorder %s27_s16, %s1040_s19  ;;  %p1045_p1 = scmp.lt.s32.totalorder %s27_s16, %s27_s16 }
   0x8   :  { %p1046_p2 = scmp.lt.s32.totalorder %s1040_s19, %s1040_s19 }
   0xa   :  { %p1047_p3 = por %p1046_p2, %p1045_p1 }
   0xc   :  { %p1048_p4 = pnand %p1047_p3, %p1041_p0 }
   0xe   :  { %1051 = shalt.err (!%p1048_p4)
}
   0xf   :  { %29 = dma.hbm_to_vmem [thread:$0]  %s1449_s1, 32, %s27_s16, [#allocation3]  }
  0x10   :  { %s1060_s22 = scalar_lea.vmem %s36_s18, 256  ;;  %p1065_p6 = scmp.lt.s32.totalorder %s36_s18, %s36_s18 }
  0x11   :  { %p1061_p5 = scmp.ne.s32.totalorder %s36_s18, %s1060_s22  ;;  %p1066_p7 = scmp.lt.s32.totalorder %s1060_s22, %s1060_s22 }
  0x13   :  { %p1067_p8 = por %p1066_p7, %p1065_p6 }
  0x15   :  { %p1068_p9 = pnand %p1067_p8, %p1061_p5 }
  0x17   :  { %1071 = shalt.err (!%p1068_p9)
}
  0x18   :  { %s1103_s0 = smov 128   ;;  %s1104_s23 = smov 8  }
  0x19   :  { %41 = dma.hbm_to_vmem [thread:$0]  %s1450_s2, 256, %s36_s18, [#allocation8], %s1103_s0, %s1103_s0, %s1104_s23  }
  0x1a   :  { %1092 = dma.done.wait [#allocation5], 16  }
  0x1b   :  { %1093 = vsyncadd [#allocation5], 4294967280 }
  0x1c   :  { %1094 = dma.done.wait [#allocation3], 32  }
  0x1d   :  { %1095 = vsyncadd [#allocation3], 4294967264 }
  0x1e   :  { %1096 = dma.done.wait [#allocation8], 256  }
  0x1f   :  { %1097 = vsyncadd [#allocation8], 4294967040 }
  0x20   :  { %51 = sfence }
  0x21   :  { %s870_s1 = sld [smem:[#allocation2 + $0x1]]  ;;  %v110_v0 = vld [vmem:[#allocation6] sm:$0x3]  ;;  %v1105_v1 = vmov 0   ;;  %s1106_s27 = smov 127   ;;  %v54_v15 = vlaneseq  ;;  %v52_v21 = vld [vmem:[#allocation7] sm:$0xff] }
  0x22   :  { %s871_s26 = sld [smem:[#allocation2 + $0x2]]  ;;  %903 = vset.pattern.permute.xlu1 %v1105_v1  ;;  %s1107_s28 = smov 126   ;;  %v53_v26 = vld [vmem:[#allocation7 + $0x8] sm:$0xff]  ;;  %v1108_v62 = vmov 3   ;;  %vm851_vm0 = vcmask 17408  }
  0x23   :  { %s106_s2 = sld [smem:[#allocation2]]  ;;  %v1162_v16 = vshrl.u32 %v54_v15, 7  ;;  %904 = vset.pattern.permute.xlu0 %v1108_v62  ;;  %s1109_s30 = smov 108   ;;  %v1116_v15 = vmov 38  }
  0x24   :  { %s872_s29 = sld [smem:[#allocation2 + $0x3]]  ;;  %s1110_s4 = smov 10  }
  0x25   :  { %v60_v17 = vsub.s32 3, %v1162_v16  ;;  %v64_v18 = vsub.s32 4, %v1162_v16  ;;  %v88_v19 = vsub.s32 5, %v1162_v16  ;;  %v92_v20 = vsub.s32 6, %v1162_v16  ;;  %s1113_s5 = smov 20   ;;  %s1128_s6 = smov 64  }
  0x26   :  { %v72_v22 = vsub.s32 1, %v1162_v16  ;;  %v96_v23 = vsub.s32 7, %v1162_v16  ;;  %v56_v24 = vsub.s32 2, %v1162_v16  ;;  %v68_v25 = vsub.s32 0, %v1162_v16  ;;  %s1129_s7 = smov [#allocation9]  }
  0x27   :  { %v113_v2 = vstv %s870_s1  ;;  %v1172_v27 = vrot.slane %v52_v21, %v60_v17  ;;  %v1176_v28 = vrot.slane %v52_v21, %v64_v18  ;;  %v1178_v29 = vrot.slane %v52_v21, %v88_v19  ;;  %s859_s8 = sshll.u32 %s1129_s7, 4  ;;  %s860_s8 = int_to_ptr.vmem [resolvable:$true] %s859_s8 }
  0x28   :  { %v114_v3 = vmul.f32 %v113_v2, %v110_v0  ;;  %v120_v4 = vstv %s871_s26  ;;  %v1180_v30 = vrot.slane %v52_v21, %v92_v20  ;;  %v1182_v31 = vrot.slane %v52_v21, %v72_v22  ;;  %s1072_s9 = scalar_lea.vmem %s860_s8, 32  ;;  %p1077_p11 = scmp.lt.s32.totalorder %s860_s8, %s860_s8 }
  0x29   :  { %v121_v5 = vmul.f32 %v120_v4, %v110_v0  ;;  %v111_v6 = vstv %s106_s2  ;;  %v1184_v32 = vrot.slane %v52_v21, %v56_v24  ;;  %v1186_v33 = vrot.slane %v52_v21, %v96_v23  ;;  %p1073_p10 = scmp.ne.s32.totalorder %s860_s8, %s1072_s9  ;;  %p1078_p12 = scmp.lt.s32.totalorder %s1072_s9, %s1072_s9 }
  0x2a   :  { %116 = vrot.lane.b32.xlu0 %v114_v3, %s1106_s27  ;;  %v112_v7 = vmul.f32 %v111_v6, %v110_v0  ;;  %v127_v10 = vstv %s872_s29  ;;  %v1188_v34 = vrot.slane %v53_v26, %v68_v25  ;;  %v1190_v35 = vrot.slane %v53_v26, %v56_v24 }
  0x2b   :  { %v1192_v36 = vrot.slane %v52_v21, %v68_v25  ;;  %v182_v37 = vmul.f32 0.0, %v1172_v27  ;;  %v183_v38 = vmul.f32 0.0, %v1176_v28  ;;  %v184_v39 = vmul.f32 0.0, %v1178_v29  ;;  %p1079_p13 = por %p1078_p12, %p1077_p11 }
  0x2c   :  { %v185_v40 = vmul.f32 0.0, %v1180_v30  ;;  %v1198_v41 = vrot.slane %v53_v26, %v60_v17  ;;  %v1200_v42 = vrot.slane %v53_v26, %v72_v22  ;;  %v180_v43 = vmul.f32 0.0, %v1182_v31 }
  0x2d   :  { %v181_v44 = vmul.f32 0.0, %v1184_v32  ;;  %v186_v45 = vmul.f32 0.0, %v1186_v33  ;;  %v187_v46 = vmul.f32 0.0, %v1188_v34  ;;  %v179_v49 = vmul.f32 0.0, %v1192_v36  ;;  %p1080_p0 = pnand %p1079_p13, %p1073_p10 }
  0x2e   :  { %123 = vrot.lane.b32.xlu0 %v121_v5, %s1107_s28  ;;  %v191_v50 = vadd.f32 %v183_v38, %v182_v37  ;;  %v192_v51 = vadd.f32 %v185_v40, %v184_v39  ;;  %v188_v53 = vmul.f32 0.0, %v1200_v42  ;;  %v1117_v17 = vmov 33  }
  0x2f   :  { %v190_v54 = vadd.f32 %v181_v44, %v180_v43  ;;  %v193_v55 = vadd.f32 %v187_v46, %v186_v45  ;;  %v1118_v19 = vmov 34   ;;  %v1119_v20 = vmov 36  }
  0x30   :  { %v195_v57 = vadd.f32 %v192_v51, %v191_v50  ;;  %v1120_v21 = vmov 37   ;;  %v1121_v22 = vmov 39  }
  0x31   :  { %v196_v59 = vadd.f32 %v193_v55, %v188_v53 }
  0x9c   :  { %v117_v8 = vpop.permute.xlu0 %116 }
  0x9d   :  { %v119_v9 = vadd.f32 %v117_v8, %v112_v7  ;;  %v1111_v7 = vmov 30   ;;  %v1112_v8 = vmov 32  }
  0xa0   :  { %v124_v11 = vpop.permute.xlu0 %123 }
  0xa1   :  { %v126_v12 = vadd.f32 %v124_v11, %v119_v9 }
  0xa3   :  { %v128_v13 = vadd.f32 %v127_v10, %v126_v12  ;;  %v1114_v12 = vmov 35  }
  0xa5   :  { %v1159_v14 = vmax.f32 %v128_v13, 0.0  ;;  %v1115_v13 = vmov 31  }
  0xa7   :  { %132 = vperm.xlu1 %903, %v1159_v14  }
  0xab   :  { %905 = vset.pattern.permute.xlu1 %v1111_v7 }
 0x122   :  { %v133_v47 = vpop.permute.xlu1 %132 }
 0x123   :  { %v135_v48 = vmul.f32 %v133_v47, %v1190_v35 }
 0x125   :  { %v136_v52 = vadd.f32 %v135_v48, %v1198_v41 }
 0x127   :  { %v189_v56 = vadd.f32 %v179_v49, %v136_v52 }
 0x129   :  { %v194_v58 = vadd.f32 %v190_v54, %v189_v56 }
 0x12b   :  { %v197_v60 = vadd.f32 %v195_v57, %v194_v58 }
 0x12d   :  { %v198_v61 = vadd.f32 %v197_v60, %v196_v59 }
 0x12f   :  { %991 = vtanh.f32 %v198_v61 }
 0x13c   :  { %v992_v63 = vpop.eup %991 }
 0x13d   :  { %204 = vrot.lane.b32.xlu1 %v992_v63, %s1109_s30  ;;  %v200_v0 = vmul.f32 0.5, %v992_v63 }
 0x13f   :  { %v201_v1 = vadd.f32 0.5, %v200_v0 }
 0x141   :  { %v202_v4 = vmul.f32 0.0, %v201_v1 }
 0x1af   :  { %v205_v2 = vpop.permute.xlu1 %204 }
 0x1b0   :  { %v207_v3 = vmul.f32 %v205_v2, %v201_v1 }
 0x1b2   :  { %209 = vrot.lane.b32.xlu0 %v207_v3, %s1110_s4 }
 0x1b6   :  { %138 = vperm.xlu0 %904, %v1159_v14  }
 0x1ba   :  { %907 = vset.pattern.permute.xlu0 %v1112_v8 }
 0x224   :  { %v210_v5 = vpop.permute.xlu0 %209 }
 0x225   :  { %v1213_v6 = vadd.f32 %v210_v5, %v202_v4  ;;  %v1122_v4 = vmov 6  }
 0x227   :  { %993 = vtanh.f32 %v1213_v6 }
 0x231   :  { %v139_v25 = vpop.permute.xlu0 %138 }
 0x232   :  { %v141_v44 = vmul.f32 %v139_v25, %v1190_v35 }
 0x234   :  { %v994_v9 = vpop.eup %993  ;;  %v142_v54 = vadd.f32 %v141_v44, %v1198_v41 }
 0x235   :  { %215 = vrot.lane.b32.xlu1 %v994_v9, %s1113_s5 }
 0x2a7   :  { %v216_v10 = vpop.permute.xlu1 %215 }
 0x2a8   :  { %v218_v11 = vmul.f32 %v216_v10, %v201_v1 }
 0x2aa   :  { %231 = vperm.xlu0 %907, %v218_v11   ;;  %221 = vperm.xlu1 %905, %v218_v11  }
 0x2ae   :  { %910 = vset.pattern.permute.xlu0 %v1114_v12  ;;  %906 = vset.pattern.permute.xlu1 %v1115_v13 }
 0x2af   :  { %246 = vperm.xlu0 %910, %v218_v11   ;;  %226 = vperm.xlu1 %906, %v218_v11  }
 0x2b3   :  { %913 = vset.pattern.permute.xlu0 %v1116_v15  ;;  %908 = vset.pattern.permute.xlu1 %v1117_v17 }
 0x2b4   :  { %261 = vperm.xlu0 %913, %v218_v11   ;;  %236 = vperm.xlu1 %908, %v218_v11  }
 0x2b8   :  { %909 = vset.pattern.permute.xlu1 %v1118_v19  ;;  %915 = vset.pattern.permute.xlu0 %v1122_v4 }
 0x2b9   :  { %241 = vperm.xlu1 %909, %v218_v11  }
 0x2bd   :  { %911 = vset.pattern.permute.xlu1 %v1119_v20 }
 0x2be   :  { %251 = vperm.xlu1 %911, %v218_v11  }
 0x2c2   :  { %912 = vset.pattern.permute.xlu1 %v1120_v21 }
 0x2c3   :  { %256 = vperm.xlu1 %912, %v218_v11  }
 0x2c7   :  { %914 = vset.pattern.permute.xlu1 %v1121_v22 }
 0x2c8   :  { %266 = vperm.xlu1 %914, %v218_v11  }
 0x2cc   :  { %916 = vset.pattern.permute.xlu1 %v1111_v7 }
 0x325   :  { %v222_v23 = vpop.permute.xlu1 %221  ;;  %v232_v37 = vpop.permute.xlu0 %231 }
 0x326   :  { %v234_v48 = vmul.f32 %v232_v37, %v1184_v32  ;;  %v224_v49 = vmul.f32 %v222_v23, %v1192_v36 }
 0x328   :  { %v270_v58 = vadd.f32 %v224_v49, %v142_v54 }
 0x32a   :  { %v227_v24 = vpop.permute.xlu1 %226  ;;  %v247_v39 = vpop.permute.xlu0 %246 }
 0x32b   :  { %v249_v45 = vmul.f32 %v247_v39, %v1178_v29  ;;  %v229_v46 = vmul.f32 %v227_v24, %v1182_v31 }
 0x32d   :  { %v271_v55 = vadd.f32 %v234_v48, %v229_v46 }
 0x32f   :  { %v237_v26 = vpop.permute.xlu1 %236  ;;  %v262_v53 = vpop.permute.xlu0 %261  ;;  %v275_v62 = vadd.f32 %v271_v55, %v270_v58 }
 0x330   :  { %v239_v50 = vmul.f32 %v237_v26, %v1172_v27  ;;  %v264_v59 = vmul.f32 %v262_v53, %v1188_v34 }
 0x334   :  { %v242_v38 = vpop.permute.xlu1 %241 }
 0x335   :  { %v244_v47 = vmul.f32 %v242_v38, %v1176_v28 }
 0x337   :  { %v272_v56 = vadd.f32 %v244_v47, %v239_v50 }
 0x339   :  { %v252_v40 = vpop.permute.xlu1 %251 }
 0x33a   :  { %v254_v43 = vmul.f32 %v252_v40, %v1180_v30 }
 0x33c   :  { %v273_v51 = vadd.f32 %v254_v43, %v249_v45 }
 0x33e   :  { %v257_v52 = vpop.permute.xlu1 %256  ;;  %v276_v60 = vadd.f32 %v273_v51, %v272_v56 }
 0x33f   :  { %v259_v57 = vmul.f32 %v257_v52, %v1186_v33 }
 0x340   :  { %v278_v1 = vadd.f32 %v276_v60, %v275_v62 }
 0x341   :  { %v274_v63 = vadd.f32 %v264_v59, %v259_v57 }
 0x343   :  { %v267_v61 = vpop.permute.xlu1 %266 }
 0x344   :  { %v269_v0 = vmul.f32 %v267_v61, %v1200_v42 }
 0x346   :  { %v277_v2 = vadd.f32 %v274_v63, %v269_v0 }
 0x348   :  { %v279_v3 = vadd.f32 %v278_v1, %v277_v2 }
 0x34a   :  { %995 = vtanh.f32 %v279_v3 }
 0x357   :  { %v996_v5 = vpop.eup %995 }
 0x358   :  { %285 = vrot.lane.b32.xlu1 %v996_v5, %s1109_s30  ;;  %v281_v9 = vmul.f32 0.5, %v996_v5 }
 0x35a   :  { %v282_v10 = vadd.f32 0.5, %v281_v9 }
 0x35c   :  { %v283_v24 = vmul.f32 %v282_v10, %v1213_v6 }
 0x3ca   :  { %v286_v11 = vpop.permute.xlu1 %285 }
 0x3cb   :  { %v288_v23 = vmul.f32 %v286_v11, %v282_v10 }
 0x3cd   :  { %290 = vrot.lane.b32.xlu0 %v288_v23, %s1110_s4 }
 0x3d1   :  { %144 = vperm.xlu0 %915, %v1159_v14  }
 0x3d5   :  { %918 = vset.pattern.permute.xlu0 %v1112_v8 }
 0x43f   :  { %v291_v25 = vpop.permute.xlu0 %290 }
 0x440   :  { %v1245_v26 = vadd.f32 %v291_v25, %v283_v24  ;;  %v1123_v24 = vmov 9  }
 0x442   :  { %997 = vtanh.f32 %v1245_v26 }
 0x44c   :  { %v145_v43 = vpop.permute.xlu0 %144 }
 0x44d   :  { %v147_v50 = vmul.f32 %v145_v43, %v1190_v35 }
 0x44f   :  { %v998_v37 = vpop.eup %997  ;;  %v148_v60 = vadd.f32 %v147_v50, %v1198_v41 }
 0x450   :  { %296 = vrot.lane.b32.xlu1 %v998_v37, %s1113_s5 }
 0x4c2   :  { %v297_v38 = vpop.permute.xlu1 %296 }
 0x4c3   :  { %v299_v39 = vmul.f32 %v297_v38, %v282_v10 }
 0x4c5   :  { %312 = vperm.xlu0 %918, %v299_v39   ;;  %302 = vperm.xlu1 %916, %v299_v39  }
 0x4c9   :  { %921 = vset.pattern.permute.xlu0 %v1114_v12  ;;  %917 = vset.pattern.permute.xlu1 %v1115_v13 }
 0x4ca   :  { %327 = vperm.xlu0 %921, %v299_v39   ;;  %307 = vperm.xlu1 %917, %v299_v39  }
 0x4ce   :  { %924 = vset.pattern.permute.xlu0 %v1116_v15  ;;  %919 = vset.pattern.permute.xlu1 %v1117_v17 }
 0x4cf   :  { %342 = vperm.xlu0 %924, %v299_v39   ;;  %317 = vperm.xlu1 %919, %v299_v39  }
 0x4d3   :  { %920 = vset.pattern.permute.xlu1 %v1118_v19  ;;  %926 = vset.pattern.permute.xlu0 %v1123_v24 }
 0x4d4   :  { %322 = vperm.xlu1 %920, %v299_v39  }
 0x4d8   :  { %922 = vset.pattern.permute.xlu1 %v1119_v20 }
 0x4d9   :  { %332 = vperm.xlu1 %922, %v299_v39  }
 0x4dd   :  { %923 = vset.pattern.permute.xlu1 %v1120_v21 }
 0x4de   :  { %337 = vperm.xlu1 %923, %v299_v39  }
 0x4e2   :  { %925 = vset.pattern.permute.xlu1 %v1121_v22 }
 0x4e3   :  { %347 = vperm.xlu1 %925, %v299_v39  }
 0x4e7   :  { %927 = vset.pattern.permute.xlu1 %v1111_v7 }
 0x540   :  { %v303_v6 = vpop.permute.xlu1 %302  ;;  %v313_v45 = vpop.permute.xlu0 %312 }
 0x541   :  { %v315_v54 = vmul.f32 %v313_v45, %v1184_v32  ;;  %v305_v55 = vmul.f32 %v303_v6, %v1192_v36 }
 0x543   :  { %v351_v0 = vadd.f32 %v305_v55, %v148_v60 }
 0x545   :  { %v308_v40 = vpop.permute.xlu1 %307  ;;  %v328_v47 = vpop.permute.xlu0 %327 }
 0x546   :  { %v330_v51 = vmul.f32 %v328_v47, %v1178_v29  ;;  %v310_v52 = vmul.f32 %v308_v40, %v1182_v31 }
 0x548   :  { %v352_v61 = vadd.f32 %v315_v54, %v310_v52 }
 0x54a   :  { %v318_v44 = vpop.permute.xlu1 %317  ;;  %v343_v59 = vpop.permute.xlu0 %342  ;;  %v356_v4 = vadd.f32 %v352_v61, %v351_v0 }
 0x54b   :  { %v320_v56 = vmul.f32 %v318_v44, %v1172_v27  ;;  %v345_v1 = vmul.f32 %v343_v59, %v1188_v34 }
 0x54f   :  { %v323_v46 = vpop.permute.xlu1 %322 }
 0x550   :  { %v325_v53 = vmul.f32 %v323_v46, %v1176_v28 }
 0x552   :  { %v353_v62 = vadd.f32 %v325_v53, %v320_v56 }
 0x554   :  { %v333_v48 = vpop.permute.xlu1 %332 }
 0x555   :  { %v335_v49 = vmul.f32 %v333_v48, %v1180_v30 }
 0x557   :  { %v354_v57 = vadd.f32 %v335_v49, %v330_v51 }
 0x559   :  { %v338_v58 = vpop.permute.xlu1 %337  ;;  %v357_v2 = vadd.f32 %v354_v57, %v353_v62 }
 0x55a   :  { %v340_v63 = vmul.f32 %v338_v58, %v1186_v33 }
 0x55b   :  { %v359_v10 = vadd.f32 %v357_v2, %v356_v4 }
 0x55c   :  { %v355_v5 = vadd.f32 %v345_v1, %v340_v63 }
 0x55e   :  { %v348_v3 = vpop.permute.xlu1 %347 }
 0x55f   :  { %v350_v9 = vmul.f32 %v348_v3, %v1200_v42 }
 0x561   :  { %v358_v11 = vadd.f32 %v355_v5, %v350_v9 }
 0x563   :  { %v360_v23 = vadd.f32 %v359_v10, %v358_v11 }
 0x565   :  { %999 = vtanh.f32 %v360_v23 }
 0x572   :  { %v1000_v25 = vpop.eup %999 }
 0x573   :  { %366 = vrot.lane.b32.xlu1 %v1000_v25, %s1109_s30  ;;  %v362_v37 = vmul.f32 0.5, %v1000_v25 }
 0x575   :  { %v363_v38 = vadd.f32 0.5, %v362_v37 }
 0x577   :  { %v364_v40 = vmul.f32 %v363_v38, %v1245_v26 }
 0x5e5   :  { %v367_v39 = vpop.permute.xlu1 %366 }
 0x5e6   :  { %v369_v6 = vmul.f32 %v367_v39, %v363_v38 }
 0x5e8   :  { %371 = vrot.lane.b32.xlu0 %v369_v6, %s1110_s4 }
 0x5ec   :  { %150 = vperm.xlu0 %926, %v1159_v14  }
 0x5f0   :  { %929 = vset.pattern.permute.xlu0 %v1112_v8 }
 0x65a   :  { %v372_v43 = vpop.permute.xlu0 %371 }
 0x65b   :  { %v1275_v44 = vadd.f32 %v372_v43, %v364_v40  ;;  %v1124_v40 = vmov 12  }
 0x65d   :  { %1001 = vtanh.f32 %v1275_v44 }
 0x667   :  { %v151_v49 = vpop.permute.xlu0 %150 }
 0x668   :  { %v153_v56 = vmul.f32 %v151_v49, %v1190_v35 }
 0x66a   :  { %v1002_v45 = vpop.eup %1001  ;;  %v154_v2 = vadd.f32 %v153_v56, %v1198_v41 }
 0x66b   :  { %377 = vrot.lane.b32.xlu1 %v1002_v45, %s1113_s5 }
 0x6dd   :  { %v378_v46 = vpop.permute.xlu1 %377 }
 0x6de   :  { %v380_v47 = vmul.f32 %v378_v46, %v363_v38 }
 0x6e0   :  { %393 = vperm.xlu0 %929, %v380_v47   ;;  %383 = vperm.xlu1 %927, %v380_v47  }
 0x6e4   :  { %932 = vset.pattern.permute.xlu0 %v1114_v12  ;;  %928 = vset.pattern.permute.xlu1 %v1115_v13 }
 0x6e5   :  { %408 = vperm.xlu0 %932, %v380_v47   ;;  %388 = vperm.xlu1 %928, %v380_v47  }
 0x6e9   :  { %935 = vset.pattern.permute.xlu0 %v1116_v15  ;;  %930 = vset.pattern.permute.xlu1 %v1117_v17 }
 0x6ea   :  { %423 = vperm.xlu0 %935, %v380_v47   ;;  %398 = vperm.xlu1 %930, %v380_v47  }
 0x6ee   :  { %931 = vset.pattern.permute.xlu1 %v1118_v19  ;;  %937 = vset.pattern.permute.xlu0 %v1124_v40 }
 0x6ef   :  { %403 = vperm.xlu1 %931, %v380_v47  }
 0x6f3   :  { %933 = vset.pattern.permute.xlu1 %v1119_v20 }
 0x6f4   :  { %413 = vperm.xlu1 %933, %v380_v47  }
 0x6f8   :  { %934 = vset.pattern.permute.xlu1 %v1120_v21 }
 0x6f9   :  { %418 = vperm.xlu1 %934, %v380_v47  }
 0x6fd   :  { %936 = vset.pattern.permute.xlu1 %v1121_v22 }
 0x6fe   :  { %428 = vperm.xlu1 %936, %v380_v47  }
 0x702   :  { %938 = vset.pattern.permute.xlu1 %v1111_v7 }
 0x75b   :  { %v384_v26 = vpop.permute.xlu1 %383  ;;  %v394_v51 = vpop.permute.xlu0 %393 }
 0x75c   :  { %v396_v60 = vmul.f32 %v394_v51, %v1184_v32  ;;  %v386_v61 = vmul.f32 %v384_v26, %v1192_v36 }
 0x75e   :  { %v432_v9 = vadd.f32 %v386_v61, %v154_v2 }
 0x760   :  { %v389_v48 = vpop.permute.xlu1 %388  ;;  %v409_v53 = vpop.permute.xlu0 %408 }
 0x761   :  { %v411_v57 = vmul.f32 %v409_v53, %v1178_v29  ;;  %v391_v58 = vmul.f32 %v389_v48, %v1182_v31 }
 0x763   :  { %v433_v3 = vadd.f32 %v396_v60, %v391_v58 }
 0x765   :  { %v399_v50 = vpop.permute.xlu1 %398  ;;  %v424_v1 = vpop.permute.xlu0 %423  ;;  %v437_v24 = vadd.f32 %v433_v3, %v432_v9 }
 0x766   :  { %v401_v62 = vmul.f32 %v399_v50, %v1172_v27  ;;  %v426_v10 = vmul.f32 %v424_v1, %v1188_v34 }
 0x76a   :  { %v404_v52 = vpop.permute.xlu1 %403 }
 0x76b   :  { %v406_v59 = vmul.f32 %v404_v52, %v1176_v28 }
 0x76d   :  { %v434_v4 = vadd.f32 %v406_v59, %v401_v62 }
 0x76f   :  { %v414_v54 = vpop.permute.xlu1 %413 }
 0x770   :  { %v416_v55 = vmul.f32 %v414_v54, %v1180_v30 }
 0x772   :  { %v435_v63 = vadd.f32 %v416_v55, %v411_v57 }
 0x774   :  { %v419_v0 = vpop.permute.xlu1 %418  ;;  %v438_v11 = vadd.f32 %v435_v63, %v434_v4 }
 0x775   :  { %v421_v5 = vmul.f32 %v419_v0, %v1186_v33 }
 0x776   :  { %v440_v38 = vadd.f32 %v438_v11, %v437_v24 }
 0x777   :  { %v436_v25 = vadd.f32 %v426_v10, %v421_v5 }
 0x779   :  { %v429_v23 = vpop.permute.xlu1 %428 }
 0x77a   :  { %v431_v37 = vmul.f32 %v429_v23, %v1200_v42 }
 0x77c   :  { %v439_v39 = vadd.f32 %v436_v25, %v431_v37 }
 0x77e   :  { %v441_v6 = vadd.f32 %v440_v38, %v439_v39 }
 0x780   :  { %1003 = vtanh.f32 %v441_v6 }
 0x78d   :  { %v1004_v43 = vpop.eup %1003 }
 0x78e   :  { %447 = vrot.lane.b32.xlu1 %v1004_v43, %s1109_s30  ;;  %v443_v45 = vmul.f32 0.5, %v1004_v43 }
 0x790   :  { %v444_v46 = vadd.f32 0.5, %v443_v45 }
 0x792   :  { %v445_v48 = vmul.f32 %v444_v46, %v1275_v44 }
 0x800   :  { %v448_v47 = vpop.permute.xlu1 %447 }
 0x801   :  { %v450_v26 = vmul.f32 %v448_v47, %v444_v46 }
 0x803   :  { %452 = vrot.lane.b32.xlu0 %v450_v26, %s1110_s4 }
 0x807   :  { %156 = vperm.xlu0 %937, %v1159_v14  }
 0x80b   :  { %940 = vset.pattern.permute.xlu0 %v1112_v8 }
 0x875   :  { %v453_v49 = vpop.permute.xlu0 %452 }
 0x876   :  { %v1305_v50 = vadd.f32 %v453_v49, %v445_v48  ;;  %v1125_v48 = vmov 15  }
 0x878   :  { %1005 = vtanh.f32 %v1305_v50 }
 0x882   :  { %v157_v55 = vpop.permute.xlu0 %156 }
 0x883   :  { %v159_v62 = vmul.f32 %v157_v55, %v1190_v35 }
 0x885   :  { %v1006_v51 = vpop.eup %1005  ;;  %v160_v11 = vadd.f32 %v159_v62, %v1198_v41 }
 0x886   :  { %458 = vrot.lane.b32.xlu1 %v1006_v51, %s1113_s5 }
 0x8f8   :  { %v459_v52 = vpop.permute.xlu1 %458 }
 0x8f9   :  { %v461_v53 = vmul.f32 %v459_v52, %v444_v46 }
 0x8fb   :  { %474 = vperm.xlu0 %940, %v461_v53   ;;  %464 = vperm.xlu1 %938, %v461_v53  }
 0x8ff   :  { %943 = vset.pattern.permute.xlu0 %v1114_v12  ;;  %939 = vset.pattern.permute.xlu1 %v1115_v13 }
 0x900   :  { %489 = vperm.xlu0 %943, %v461_v53   ;;  %469 = vperm.xlu1 %939, %v461_v53  }
 0x904   :  { %946 = vset.pattern.permute.xlu0 %v1116_v15  ;;  %941 = vset.pattern.permute.xlu1 %v1117_v17 }
 0x905   :  { %504 = vperm.xlu0 %946, %v461_v53   ;;  %479 = vperm.xlu1 %941, %v461_v53  }
 0x909   :  { %942 = vset.pattern.permute.xlu1 %v1118_v19  ;;  %948 = vset.pattern.permute.xlu0 %v1125_v48 }
 0x90a   :  { %484 = vperm.xlu1 %942, %v461_v53  }
 0x90e   :  { %944 = vset.pattern.permute.xlu1 %v1119_v20 }
 0x90f   :  { %494 = vperm.xlu1 %944, %v461_v53  }
 0x913   :  { %945 = vset.pattern.permute.xlu1 %v1120_v21 }
 0x914   :  { %499 = vperm.xlu1 %945, %v461_v53  }
 0x918   :  { %947 = vset.pattern.permute.xlu1 %v1121_v22 }
 0x919   :  { %509 = vperm.xlu1 %947, %v461_v53  }
 0x91d   :  { %949 = vset.pattern.permute.xlu1 %v1111_v7 }
 0x976   :  { %v465_v44 = vpop.permute.xlu1 %464  ;;  %v475_v57 = vpop.permute.xlu0 %474 }
 0x977   :  { %v477_v2 = vmul.f32 %v475_v57, %v1184_v32  ;;  %v467_v3 = vmul.f32 %v465_v44, %v1192_v36 }
 0x979   :  { %v513_v37 = vadd.f32 %v467_v3, %v160_v11 }
 0x97b   :  { %v470_v54 = vpop.permute.xlu1 %469  ;;  %v490_v59 = vpop.permute.xlu0 %489 }
 0x97c   :  { %v492_v63 = vmul.f32 %v490_v59, %v1178_v29  ;;  %v472_v0 = vmul.f32 %v470_v54, %v1182_v31 }
 0x97e   :  { %v514_v23 = vadd.f32 %v477_v2, %v472_v0 }
 0x980   :  { %v480_v56 = vpop.permute.xlu1 %479  ;;  %v505_v10 = vpop.permute.xlu0 %504  ;;  %v518_v40 = vadd.f32 %v514_v23, %v513_v37 }
 0x981   :  { %v482_v4 = vmul.f32 %v480_v56, %v1172_v27  ;;  %v507_v38 = vmul.f32 %v505_v10, %v1188_v34 }
 0x985   :  { %v485_v58 = vpop.permute.xlu1 %484 }
 0x986   :  { %v487_v1 = vmul.f32 %v485_v58, %v1176_v28 }
 0x988   :  { %v515_v24 = vadd.f32 %v487_v1, %v482_v4 }
 0x98a   :  { %v495_v60 = vpop.permute.xlu1 %494 }
 0x98b   :  { %v497_v61 = vmul.f32 %v495_v60, %v1180_v30 }
 0x98d   :  { %v516_v5 = vadd.f32 %v497_v61, %v492_v63 }
 0x98f   :  { %v500_v9 = vpop.permute.xlu1 %499  ;;  %v519_v39 = vadd.f32 %v516_v5, %v515_v24 }
 0x990   :  { %v502_v25 = vmul.f32 %v500_v9, %v1186_v33 }
 0x991   :  { %v521_v46 = vadd.f32 %v519_v39, %v518_v40 }
 0x992   :  { %v517_v43 = vadd.f32 %v507_v38, %v502_v25 }
 0x994   :  { %v510_v6 = vpop.permute.xlu1 %509 }
 0x995   :  { %v512_v45 = vmul.f32 %v510_v6, %v1200_v42 }
 0x997   :  { %v520_v47 = vadd.f32 %v517_v43, %v512_v45 }
 0x999   :  { %v522_v26 = vadd.f32 %v521_v46, %v520_v47 }
 0x99b   :  { %1007 = vtanh.f32 %v522_v26 }
 0x9a8   :  { %v1008_v49 = vpop.eup %1007 }
 0x9a9   :  { %528 = vrot.lane.b32.xlu1 %v1008_v49, %s1109_s30  ;;  %v524_v51 = vmul.f32 0.5, %v1008_v49 }
 0x9ab   :  { %v525_v52 = vadd.f32 0.5, %v524_v51 }
 0x9ad   :  { %v526_v54 = vmul.f32 %v525_v52, %v1305_v50 }
 0xa1b   :  { %v529_v53 = vpop.permute.xlu1 %528 }
 0xa1c   :  { %v531_v44 = vmul.f32 %v529_v53, %v525_v52 }
 0xa1e   :  { %533 = vrot.lane.b32.xlu0 %v531_v44, %s1110_s4 }
 0xa22   :  { %162 = vperm.xlu0 %948, %v1159_v14  }
 0xa26   :  { %951 = vset.pattern.permute.xlu0 %v1112_v8 }
 0xa90   :  { %v534_v55 = vpop.permute.xlu0 %533 }
 0xa91   :  { %v1335_v56 = vadd.f32 %v534_v55, %v526_v54  ;;  %v1126_v54 = vmov 18  }
 0xa93   :  { %1009 = vtanh.f32 %v1335_v56 }
 0xa9d   :  { %v163_v61 = vpop.permute.xlu0 %162 }
 0xa9e   :  { %v165_v4 = vmul.f32 %v163_v61, %v1190_v35 }
 0xaa0   :  { %v1010_v57 = vpop.eup %1009  ;;  %v166_v39 = vadd.f32 %v165_v4, %v1198_v41 }
 0xaa1   :  { %539 = vrot.lane.b32.xlu1 %v1010_v57, %s1113_s5 }
 0xb13   :  { %v540_v58 = vpop.permute.xlu1 %539 }
 0xb14   :  { %v542_v59 = vmul.f32 %v540_v58, %v525_v52 }
 0xb16   :  { %555 = vperm.xlu0 %951, %v542_v59   ;;  %545 = vperm.xlu1 %949, %v542_v59  }
 0xb1a   :  { %954 = vset.pattern.permute.xlu0 %v1114_v12  ;;  %950 = vset.pattern.permute.xlu1 %v1115_v13 }
 0xb1b   :  { %570 = vperm.xlu0 %954, %v542_v59   ;;  %550 = vperm.xlu1 %950, %v542_v59  }
 0xb1f   :  { %957 = vset.pattern.permute.xlu0 %v1116_v15  ;;  %952 = vset.pattern.permute.xlu1 %v1117_v17 }
 0xb20   :  { %585 = vperm.xlu0 %957, %v542_v59   ;;  %560 = vperm.xlu1 %952, %v542_v59  }
 0xb24   :  { %953 = vset.pattern.permute.xlu1 %v1118_v19  ;;  %959 = vset.pattern.permute.xlu0 %v1126_v54 }
 0xb25   :  { %565 = vperm.xlu1 %953, %v542_v59  }
 0xb29   :  { %955 = vset.pattern.permute.xlu1 %v1119_v20 }
 0xb2a   :  { %575 = vperm.xlu1 %955, %v542_v59  }
 0xb2e   :  { %956 = vset.pattern.permute.xlu1 %v1120_v21 }
 0xb2f   :  { %580 = vperm.xlu1 %956, %v542_v59  }
 0xb33   :  { %958 = vset.pattern.permute.xlu1 %v1121_v22 }
 0xb34   :  { %590 = vperm.xlu1 %958, %v542_v59  }
 0xb38   :  { %960 = vset.pattern.permute.xlu1 %v1111_v7 }
 0xb91   :  { %v546_v50 = vpop.permute.xlu1 %545  ;;  %v556_v63 = vpop.permute.xlu0 %555 }
 0xb92   :  { %v558_v11 = vmul.f32 %v556_v63, %v1184_v32  ;;  %v548_v23 = vmul.f32 %v546_v50, %v1192_v36 }
 0xb94   :  { %v594_v45 = vadd.f32 %v548_v23, %v166_v39 }
 0xb96   :  { %v551_v60 = vpop.permute.xlu1 %550  ;;  %v571_v1 = vpop.permute.xlu0 %570 }
 0xb97   :  { %v573_v5 = vmul.f32 %v571_v1, %v1178_v29  ;;  %v553_v9 = vmul.f32 %v551_v60, %v1182_v31 }
 0xb99   :  { %v595_v6 = vadd.f32 %v558_v11, %v553_v9 }
 0xb9b   :  { %v561_v62 = vpop.permute.xlu1 %560  ;;  %v586_v38 = vpop.permute.xlu0 %585  ;;  %v599_v48 = vadd.f32 %v595_v6, %v594_v45 }
 0xb9c   :  { %v563_v24 = vmul.f32 %v561_v62, %v1172_v27  ;;  %v588_v46 = vmul.f32 %v586_v38, %v1188_v34 }
 0xba0   :  { %v566_v0 = vpop.permute.xlu1 %565 }
 0xba1   :  { %v568_v10 = vmul.f32 %v566_v0, %v1176_v28 }
 0xba3   :  { %v596_v40 = vadd.f32 %v568_v10, %v563_v24 }
 0xba5   :  { %v576_v2 = vpop.permute.xlu1 %575 }
 0xba6   :  { %v578_v3 = vmul.f32 %v576_v2, %v1180_v30 }
 0xba8   :  { %v597_v25 = vadd.f32 %v578_v3, %v573_v5 }
 0xbaa   :  { %v581_v37 = vpop.permute.xlu1 %580  ;;  %v600_v47 = vadd.f32 %v597_v25, %v596_v40 }
 0xbab   :  { %v583_v43 = vmul.f32 %v581_v37, %v1186_v33 }
 0xbac   :  { %v602_v52 = vadd.f32 %v600_v47, %v599_v48 }
 0xbad   :  { %v598_v49 = vadd.f32 %v588_v46, %v583_v43 }
 0xbaf   :  { %v591_v26 = vpop.permute.xlu1 %590 }
 0xbb0   :  { %v593_v51 = vmul.f32 %v591_v26, %v1200_v42 }
 0xbb2   :  { %v601_v53 = vadd.f32 %v598_v49, %v593_v51 }
 0xbb4   :  { %v603_v44 = vadd.f32 %v602_v52, %v601_v53 }
 0xbb6   :  { %1011 = vtanh.f32 %v603_v44 }
 0xbc3   :  { %v1012_v55 = vpop.eup %1011 }
 0xbc4   :  { %609 = vrot.lane.b32.xlu1 %v1012_v55, %s1109_s30  ;;  %v605_v57 = vmul.f32 0.5, %v1012_v55 }
 0xbc6   :  { %v606_v58 = vadd.f32 0.5, %v605_v57 }
 0xbc8   :  { %v607_v60 = vmul.f32 %v606_v58, %v1335_v56 }
 0xc36   :  { %v610_v59 = vpop.permute.xlu1 %609 }
 0xc37   :  { %v612_v50 = vmul.f32 %v610_v59, %v606_v58 }
 0xc39   :  { %614 = vrot.lane.b32.xlu0 %v612_v50, %s1110_s4 }
 0xc3d   :  { %168 = vperm.xlu0 %959, %v1159_v14  }
 0xc41   :  { %962 = vset.pattern.permute.xlu0 %v1112_v8 }
 0xcab   :  { %v615_v61 = vpop.permute.xlu0 %614 }
 0xcac   :  { %v1365_v62 = vadd.f32 %v615_v61, %v607_v60  ;;  %v1127_v60 = vmov 21  }
 0xcae   :  { %1013 = vtanh.f32 %v1365_v62 }
 0xcb8   :  { %v169_v3 = vpop.permute.xlu0 %168 }
 0xcb9   :  { %v171_v24 = vmul.f32 %v169_v3, %v1190_v35 }
 0xcbb   :  { %v1014_v63 = vpop.eup %1013  ;;  %v172_v47 = vadd.f32 %v171_v24, %v1198_v41 }
 0xcbc   :  { %620 = vrot.lane.b32.xlu1 %v1014_v63, %s1113_s5 }
 0xd2e   :  { %v621_v0 = vpop.permute.xlu1 %620 }
 0xd2f   :  { %v623_v1 = vmul.f32 %v621_v0, %v606_v58 }
 0xd31   :  { %636 = vperm.xlu0 %962, %v623_v1   ;;  %626 = vperm.xlu1 %960, %v623_v1  }
 0xd35   :  { %965 = vset.pattern.permute.xlu0 %v1114_v12  ;;  %961 = vset.pattern.permute.xlu1 %v1115_v13 }
 0xd36   :  { %651 = vperm.xlu0 %965, %v623_v1   ;;  %631 = vperm.xlu1 %961, %v623_v1  }
 0xd3a   :  { %968 = vset.pattern.permute.xlu0 %v1116_v15  ;;  %963 = vset.pattern.permute.xlu1 %v1117_v17 }
 0xd3b   :  { %666 = vperm.xlu0 %968, %v623_v1   ;;  %641 = vperm.xlu1 %963, %v623_v1  }
 0xd3f   :  { %964 = vset.pattern.permute.xlu1 %v1118_v19  ;;  %970 = vset.pattern.permute.xlu0 %v1127_v60 }
 0xd40   :  { %646 = vperm.xlu1 %964, %v623_v1  }
 0xd44   :  { %966 = vset.pattern.permute.xlu1 %v1119_v20 }
 0xd45   :  { %656 = vperm.xlu1 %966, %v623_v1  }
 0xd49   :  { %967 = vset.pattern.permute.xlu1 %v1120_v21 }
 0xd4a   :  { %661 = vperm.xlu1 %967, %v623_v1  }
 0xd4e   :  { %969 = vset.pattern.permute.xlu1 %v1121_v22 }
 0xd4f   :  { %671 = vperm.xlu1 %969, %v623_v1  }
 0xd53   :  { %971 = vset.pattern.permute.xlu1 %v1111_v7 }
 0xdac   :  { %v627_v56 = vpop.permute.xlu1 %626  ;;  %v637_v5 = vpop.permute.xlu0 %636 }
 0xdad   :  { %v639_v39 = vmul.f32 %v637_v5, %v1184_v32  ;;  %v629_v6 = vmul.f32 %v627_v56, %v1192_v36 }
 0xdaf   :  { %v675_v51 = vadd.f32 %v629_v6, %v172_v47 }
 0xdb1   :  { %v632_v2 = vpop.permute.xlu1 %631  ;;  %v652_v10 = vpop.permute.xlu0 %651 }
 0xdb2   :  { %v654_v25 = vmul.f32 %v652_v10, %v1178_v29  ;;  %v634_v37 = vmul.f32 %v632_v2, %v1182_v31 }
 0xdb4   :  { %v676_v26 = vadd.f32 %v639_v39, %v634_v37 }
 0xdb6   :  { %v642_v4 = vpop.permute.xlu1 %641  ;;  %v667_v46 = vpop.permute.xlu0 %666  ;;  %v680_v54 = vadd.f32 %v676_v26, %v675_v51 }
 0xdb7   :  { %v644_v40 = vmul.f32 %v642_v4, %v1172_v27  ;;  %v669_v52 = vmul.f32 %v667_v46, %v1188_v34 }
 0xdbb   :  { %v647_v9 = vpop.permute.xlu1 %646 }
 0xdbc   :  { %v649_v38 = vmul.f32 %v647_v9, %v1176_v28 }
 0xdbe   :  { %v677_v48 = vadd.f32 %v649_v38, %v644_v40 }
 0xdc0   :  { %v657_v11 = vpop.permute.xlu1 %656 }
 0xdc1   :  { %v659_v23 = vmul.f32 %v657_v11, %v1180_v30 }
 0xdc3   :  { %v678_v43 = vadd.f32 %v659_v23, %v654_v25 }
 0xdc5   :  { %v662_v45 = vpop.permute.xlu1 %661  ;;  %v681_v53 = vadd.f32 %v678_v43, %v677_v48 }
 0xdc6   :  { %v664_v49 = vmul.f32 %v662_v45, %v1186_v33 }
 0xdc7   :  { %v683_v58 = vadd.f32 %v681_v53, %v680_v54 }
 0xdc8   :  { %v679_v55 = vadd.f32 %v669_v52, %v664_v49 }
 0xdca   :  { %v672_v44 = vpop.permute.xlu1 %671 }
 0xdcb   :  { %v674_v57 = vmul.f32 %v672_v44, %v1200_v42 }
 0xdcd   :  { %v682_v59 = vadd.f32 %v679_v55, %v674_v57 }
 0xdcf   :  { %v684_v50 = vadd.f32 %v683_v58, %v682_v59 }
 0xdd1   :  { %1015 = vtanh.f32 %v684_v50 }
 0xdde   :  { %v1016_v61 = vpop.eup %1015 }
 0xddf   :  { %690 = vrot.lane.b32.xlu1 %v1016_v61, %s1109_s30  ;;  %v686_v63 = vmul.f32 0.5, %v1016_v61 }
 0xde1   :  { %v687_v0 = vadd.f32 0.5, %v686_v63 }
 0xde3   :  { %v688_v2 = vmul.f32 %v687_v0, %v1365_v62 }
 0xe51   :  { %v691_v1 = vpop.permute.xlu1 %690 }
 0xe52   :  { %v693_v56 = vmul.f32 %v691_v1, %v687_v0 }
 0xe54   :  { %695 = vrot.lane.b32.xlu0 %v693_v56, %s1110_s4 }
 0xe58   :  { %174 = vperm.xlu0 %970, %v1159_v14  }
 0xe5c   :  { %973 = vset.pattern.permute.xlu0 %v1112_v8 }
 0xec6   :  { %v696_v3 = vpop.permute.xlu0 %695 }
 0xec7   :  { %v1395_v4 = vadd.f32 %v696_v3, %v688_v2 }
 0xec9   :  { %1017 = vtanh.f32 %v1395_v4 }
 0xed3   :  { %v175_v11 = vpop.permute.xlu0 %174 }
 0xed4   :  { %v177_v39 = vmul.f32 %v175_v11, %v1190_v35 }
 0xed6   :  { %v1018_v5 = vpop.eup %1017  ;;  %v178_v49 = vadd.f32 %v177_v39, %v1198_v41 }
 0xed7   :  { %701 = vrot.lane.b32.xlu1 %v1018_v5, %s1113_s5 }
 0xf49   :  { %v702_v9 = vpop.permute.xlu1 %701 }
 0xf4a   :  { %v704_v10 = vmul.f32 %v702_v9, %v687_v0 }
 0xf4c   :  { %717 = vperm.xlu0 %973, %v704_v10   ;;  %707 = vperm.xlu1 %971, %v704_v10  }
 0xf50   :  { %976 = vset.pattern.permute.xlu0 %v1114_v12  ;;  %972 = vset.pattern.permute.xlu1 %v1115_v13 }
 0xf51   :  { %732 = vperm.xlu0 %976, %v704_v10   ;;  %712 = vperm.xlu1 %972, %v704_v10  }
 0xf55   :  { %979 = vset.pattern.permute.xlu0 %v1116_v15  ;;  %974 = vset.pattern.permute.xlu1 %v1117_v17 }
 0xf56   :  { %747 = vperm.xlu0 %979, %v704_v10   ;;  %722 = vperm.xlu1 %974, %v704_v10  }
 0xf5a   :  { %975 = vset.pattern.permute.xlu1 %v1118_v19  ;;  %981 = vset.pattern.permute.xlu0 %v1111_v7 }
 0xf5b   :  { %727 = vperm.xlu1 %975, %v704_v10  }
 0xf5f   :  { %977 = vset.pattern.permute.xlu1 %v1119_v20 }
 0xf60   :  { %737 = vperm.xlu1 %977, %v704_v10  }
 0xf64   :  { %978 = vset.pattern.permute.xlu1 %v1120_v21 }
 0xf65   :  { %742 = vperm.xlu1 %978, %v704_v10  }
 0xf69   :  { %980 = vset.pattern.permute.xlu1 %v1121_v22 }
 0xf6a   :  { %752 = vperm.xlu1 %980, %v704_v10  }
 0xf6e   :  { %982 = vset.pattern.permute.xlu1 %v1115_v13 }
 0xfc7   :  { %v708_v14 = vpop.permute.xlu1 %707  ;;  %v718_v24 = vpop.permute.xlu0 %717 }
 0xfc8   :  { %v720_v13 = vmul.f32 %v718_v24, %v1184_v32  ;;  %v710_v45 = vmul.f32 %v708_v14, %v1192_v36 }
 0xfca   :  { %v756_v53 = vadd.f32 %v710_v45, %v178_v49 }
 0xfcc   :  { %v713_v62 = vpop.permute.xlu1 %712  ;;  %v733_v37 = vpop.permute.xlu0 %732 }
 0xfcd   :  { %v735_v6 = vmul.f32 %v733_v37, %v1178_v29  ;;  %v715_v40 = vmul.f32 %v713_v62, %v1182_v31 }
 0xfcf   :  { %v757_v51 = vadd.f32 %v720_v13, %v715_v40 }
 0xfd1   :  { %v723_v23 = vpop.permute.xlu1 %722  ;;  %v748_v48 = vpop.permute.xlu0 %747  ;;  %v761_v57 = vadd.f32 %v757_v51, %v756_v53 }
 0xfd2   :  { %v725_v46 = vmul.f32 %v723_v23, %v1172_v27  ;;  %v750_v44 = vmul.f32 %v748_v48, %v1188_v34 }
 0xfd6   :  { %v728_v25 = vpop.permute.xlu1 %727 }
 0xfd7   :  { %v730_v43 = vmul.f32 %v728_v25, %v1176_v28  ;;  %v1023_v25 = vld [vmem:[#allocation7 + $0x8] sm:$0xff] }
 0xfd9   :  { %v758_v52 = vadd.f32 %v730_v43, %v725_v46 }
 0xfdb   :  { %v738_v7 = vpop.permute.xlu1 %737 }
 0xfdc   :  { %v740_v38 = vmul.f32 %v738_v7, %v1180_v30 }
 0xfde   :  { %v759_v47 = vadd.f32 %v740_v38, %v735_v6 }
 0xfe0   :  { %v743_v26 = vpop.permute.xlu1 %742  ;;  %v762_v54 = vadd.f32 %v759_v47, %v758_v52 }
 0xfe1   :  { %v745_v35 = vmul.f32 %v743_v26, %v1186_v33 }
 0xfe2   :  { %v764_v50 = vadd.f32 %v762_v54, %v761_v57 }
 0xfe3   :  { %v760_v58 = vadd.f32 %v750_v44, %v745_v35 }
 0xfe5   :  { %v753_v55 = vpop.permute.xlu1 %752 }
 0xfe6   :  { %v755_v59 = vmul.f32 %v753_v55, %v1200_v42 }
 0xfe8   :  { %v763_v60 = vadd.f32 %v760_v58, %v755_v59 }
 0xfea   :  { %v765_v61 = vadd.f32 %v764_v50, %v763_v60 }
 0xfec   :  { %1019 = vtanh.f32 %v765_v61 }
 0xff9   :  { %v1020_v63 = vpop.eup %1019 }
 0xffa   :  { %771 = vrot.lane.b32.xlu1 %v1020_v63, %s1109_s30  ;;  %v767_v41 = vmul.f32 0.5, %v1020_v63 }
 0xffc   :  { %v768_v0 = vadd.f32 0.5, %v767_v41 }
 0xffe   :  { %v769_v2 = vmul.f32 %v768_v0, %v1395_v4 }
0x106c   :  { %v772_v1 = vpop.permute.xlu1 %771 }
0x106d   :  { %v774_v56 = vmul.f32 %v772_v1, %v768_v0 }
0x106f   :  { %776 = vrot.lane.b32.xlu0 %v774_v56, %s1110_s4 }
0x10e1   :  { %v777_v3 = vpop.permute.xlu0 %776 }
0x10e2   :  { %v779_v5 = vadd.f32 %v777_v3, %v769_v2 }
0x10e4   :  { %1021 = vtanh.f32 %v779_v5 }
0x10f1   :  { %v1022_v9 = vpop.eup %1021 }
0x10f2   :  { %782 = vrot.lane.b32.xlu1 %v1022_v9, %s1113_s5 }
0x1164   :  { %v783_v10 = vpop.permute.xlu1 %782 }
0x1165   :  { %v785_v14 = vmul.f32 %v783_v10, %v768_v0 }
0x1167   :  { %793 = vperm.xlu1 %982, %v785_v14   ;;  %788 = vperm.xlu0 %981, %v785_v14  }
0x116b   :  { %983 = vset.pattern.permute.xlu1 %v1112_v8  ;;  %984 = vset.pattern.permute.xlu0 %v1117_v17 }
0x116c   :  { %798 = vperm.xlu1 %983, %v785_v14   ;;  %803 = vperm.xlu0 %984, %v785_v14  }
0x1170   :  { %985 = vset.pattern.permute.xlu1 %v1118_v19  ;;  %987 = vset.pattern.permute.xlu0 %v1119_v20 }
0x1171   :  { %808 = vperm.xlu1 %985, %v785_v14   ;;  %818 = vperm.xlu0 %987, %v785_v14  }
0x1175   :  { %986 = vset.pattern.permute.xlu1 %v1114_v12  ;;  %990 = vset.pattern.permute.xlu0 %v1121_v22 }
0x1176   :  { %813 = vperm.xlu1 %986, %v785_v14   ;;  %833 = vperm.xlu0 %990, %v785_v14  }
0x117a   :  { %988 = vset.pattern.permute.xlu1 %v1120_v21 }
0x117b   :  { %823 = vperm.xlu1 %988, %v785_v14  }
0x117f   :  { %989 = vset.pattern.permute.xlu1 %v1116_v15  ;;  %v65_v15 = vrot.slane %v1023_v25, %v64_v18 }
0x1180   :  { %828 = vperm.xlu1 %989, %v785_v14  }
0x11e2   :  { %v794_v8 = vpop.permute.xlu1 %793  ;;  %v789_v17 = vpop.permute.xlu0 %788 }
0x11e3   :  { %v796_v37 = vmul.f32 %v794_v8, %v1182_v31  ;;  %v791_v7 = vmul.f32 %v789_v17, %v1192_v36 }
0x11e5   :  { %v837_v43 = vadd.f32 %v791_v7, %v65_v15 }
0x11e7   :  { %v799_v4 = vpop.permute.xlu1 %798  ;;  %v804_v62 = vpop.permute.xlu0 %803 }
0x11e8   :  { %v801_v12 = vmul.f32 %v799_v4, %v1184_v32  ;;  %v806_v38 = vmul.f32 %v804_v62, %v1172_v27 }
0x11ea   :  { %v838_v6 = vadd.f32 %v801_v12, %v796_v37 }
0x11ec   :  { %v809_v19 = vpop.permute.xlu1 %808  ;;  %v819_v11 = vpop.permute.xlu0 %818  ;;  %v842_v45 = vadd.f32 %v838_v6, %v837_v43 }
0x11ed   :  { %v811_v22 = vmul.f32 %v809_v19, %v1176_v28  ;;  %v821_v24 = vmul.f32 %v819_v11, %v1180_v30 }
0x11f1   :  { %v814_v20 = vpop.permute.xlu1 %813  ;;  %v834_v40 = vpop.permute.xlu0 %833 }
0x11f2   :  { %v816_v23 = vmul.f32 %v814_v20, %v1178_v29  ;;  %v839_v29 = vadd.f32 %v811_v22, %v806_v38  ;;  %v836_v16 = vmul.f32 %v834_v40, %v1200_v42 }
0x11f4   :  { %v840_v39 = vadd.f32 %v821_v24, %v816_v23 }
0x11f6   :  { %v824_v21 = vpop.permute.xlu1 %823  ;;  %v843_v28 = vadd.f32 %v840_v39, %v839_v29 }
0x11f7   :  { %v826_v30 = vmul.f32 %v824_v21, %v1186_v33 }
0x11f8   :  { %v845_v31 = vadd.f32 %v843_v28, %v842_v45 }
0x11fb   :  { %v829_v32 = vpop.permute.xlu1 %828 }
0x11fc   :  { %v831_v13 = vmul.f32 %v829_v32, %v1188_v34 }
0x11fe   :  { %v841_v18 = vadd.f32 %v831_v13, %v826_v30 }
0x1200   :  { %v844_v46 = vadd.f32 %v841_v18, %v836_v16 }
0x1202   :  { %v846_v36 = vadd.f32 %v845_v31, %v844_v46 }
0x1204   :  { %848 = vrot.lane.b32.xlu1 %v846_v36, %s1128_s6 }
0x1276   :  { %v849_v27 = vpop.permute.xlu1 %848 }
0x1277   :  { %852 = vst.msk [vmem:[#allocation9] sm:$0x3] %vm851_vm0, %v849_v27 }
0x1278   :  { %1083 = shalt.err (!%p1080_p0)
}
0x1279   :  { %862 = dma.vmem_to_hbm [thread:$0]  %s860_s8, 32, %s1451_s3, [#allocation4]  }
0x127a   :  { %1098 = dma.done.wait [#allocation4], 32  }
0x127b   :  { %1099 = vsyncadd [#allocation4], 4294967264 }
0x127c   :  { %866 = vsyncpa [#allocation3], 1 }
0x127d   :  { %867 = vsyncpa [#allocation8], 1 }
0x127e   :  { %868 = vsyncpa [#allocation4], 1 }
0x127f   :  { %869 = vsyncpa [#allocation5], 1 }

</bundles_post_ra>
